<compile_context>
chip_gen: v5e
topology: v5e:2x2
jax: 0.10.0
libtpu: 0.0.40
codegen_flags: <defaults>
</compile_context>

<pallas_src>
import functools

import jax
import jax.numpy as jnp
from jax.experimental import pallas as pl
from jax.experimental.pallas import tpu as pltpu

BF16 = jnp.bfloat16
F32 = jnp.float32


def _round_up(n, m):
    return ((n + m - 1) // m) * m


# ------------------------------ in-kernel math -------------------------------

def _erf_approx(v):
    # Abramowitz & Stegun 7.1.26 (max abs err ~1.5e-7).
    # TODO(synk): exact torch.erf replaced by this approximation in-kernel.
    p_c = 0.3275911
    a1, a2, a3, a4, a5 = (0.254829592, -0.284496736, 1.421413741,
                          -1.453152027, 1.061405429)
    av = jnp.abs(v)
    t = pl.reciprocal(1.0 + p_c * av, approx=True)        # EUP, not VALU divide
    poly = ((((a5 * t + a4) * t + a3) * t + a2) * t + a1) * t
    y = 1.0 - poly * jnp.exp(-av * av)
    return jnp.where(v < 0.0, -y, y)


def _gelu_exact(v):
    return 0.5 * v * (1.0 + _erf_approx(v * 0.7071067811865476))


def _layer_norm(v, g, b, eps):
    mu = jnp.mean(v, axis=-1, keepdims=True)
    vc = v - mu
    var = jnp.mean(vc * vc, axis=-1, keepdims=True)        # biased var (PyTorch LN)
    return vc * jax.lax.rsqrt(var + eps) * g + b


# --------------------------------- kernel ------------------------------------

def _vit_kernel(patch_ref, patch_w_ref, add_ref,
                ln1_g_ref, ln1_b_ref, qkv_w_ref, qkv_b_ref,
                proj_w_ref, proj_b_ref, ln2_g_ref, ln2_b_ref,
                fc1_w_ref, fc1_b_ref, fc2_w_ref, fc2_b_ref,
                norm_g_ref, norm_b_ref, mlph_w_ref, head_w_ref, head_b_ref,
                logits_ref, att_ref,
                x_scr,
                *, num_heads, head_dim, seq, seq_pad, eps):
    l = pl.program_id(1)
    n_layers = pl.num_programs(1)
    E = num_heads * head_dim
    scale = head_dim ** -0.5

    # ---- layer 0: patch embed + cls-token/pos-embed/conv-bias additive slab ----
    @pl.when(l == 0)
    def _():
        x_scr[...] = (jnp.dot(patch_ref[...].astype(BF16), patch_w_ref[...],
                              preferred_element_type=F32) + add_ref[...])

    x = x_scr[...]                                          # (S_pad, E) f32 residual

    # ---- attention branch ----
    h1 = _layer_norm(x, ln1_g_ref[...], ln1_b_ref[...], eps)
    qkv = (jnp.dot(h1.astype(BF16), qkv_w_ref[...], preferred_element_type=F32)
           + qkv_b_ref[...])                                # (S_pad, 3E), lane-dense

    def split_heads(t):  # (S_pad, E) -> (nH, S_pad, Dh); slice-only relayout
        return jnp.stack([t[:, h * head_dim:(h + 1) * head_dim]
                          for h in range(num_heads)], axis=0)

    q = split_heads(qkv[:, 0 * E:1 * E]).astype(BF16)
    k = split_heads(qkv[:, 1 * E:2 * E]).astype(BF16)
    v = split_heads(qkv[:, 2 * E:3 * E]).astype(BF16)

    s = jnp.einsum('hqd,hkd->hqk', q, k, preferred_element_type=F32) * scale
    col = jax.lax.broadcasted_iota(jnp.int32, (1, 1, seq_pad), 2)
    s = s + jnp.where(col < seq, 0.0, -1e30).astype(F32)    # mask padded key columns
    s = s - jnp.max(s, axis=-1, keepdims=True)
    e = jnp.exp(s)
    p = e * pl.reciprocal(jnp.sum(e, axis=-1, keepdims=True), approx=True)
    o = jnp.einsum('hqk,hkd->hqd', p.astype(BF16), v, preferred_element_type=F32)
    o_cat = jnp.concatenate([o[h] for h in range(num_heads)], axis=-1)  # (S_pad, E)
    x = x + (jnp.dot(o_cat.astype(BF16), proj_w_ref[...], preferred_element_type=F32)
             + proj_b_ref[...])

    # ---- MLP branch ----
    h2 = _layer_norm(x, ln2_g_ref[...], ln2_b_ref[...], eps)
    f1 = _gelu_exact(jnp.dot(h2.astype(BF16), fc1_w_ref[...],
                             preferred_element_type=F32) + fc1_b_ref[...])
    x = x + (jnp.dot(f1.astype(BF16), fc2_w_ref[...], preferred_element_type=F32)
             + fc2_b_ref[...])
    x_scr[...] = x

    # ---- last layer: outputs (lane-dense padded slabs) ----
    @pl.when(l == n_layers - 1)
    def _():
        # att = mlp_head(x) on PRE-norm tokens (matches PyTorch ordering);
        # weights zero-padded to 128 lanes -> unmasked stores.
        att_ref[...] = jnp.dot(x.astype(BF16), mlph_w_ref[...],
                               preferred_element_type=F32)
        # final LN + classification head on the cls row only.
        cls_n = _layer_norm(x[0:1, :], norm_g_ref[...], norm_b_ref[...], eps)
        logits_ref[...] = (jnp.dot(cls_n.astype(BF16), head_w_ref[...],
                                   preferred_element_type=F32) + head_b_ref[...])


# argument order of the packed weights (after the per-image patch slab).
_PACK_ORDER = (
    ("patch_w", "const"), ("add", "const"),
    ("ln1_g", "layer"), ("ln1_b", "layer"),
    ("qkv_w", "layer"), ("qkv_b", "layer"),
    ("proj_w", "layer"), ("proj_b", "layer"),
    ("ln2_g", "layer"), ("ln2_b", "layer"),
    ("fc1_w", "layer"), ("fc1_b", "layer"),
    ("fc2_w", "layer"), ("fc2_b", "layer"),
    ("norm_g", "const"), ("norm_b", "const"),
    ("mlp_head_w", "const"), ("head_w", "const"), ("head_b", "const"),
)


# --------------------------- parameter creation ------------------------------

def init_params(key, cfg):
    C, P, E = cfg["in_chans"], cfg["patch"], cfg["embed_dim"]
    depth, ncls = cfg["depth"], cfg["num_classes"]
    hidden = int(E * cfg["mlp_ratio"])
    Np = (cfg["img_size"] // P) ** 2

    keys = iter(jax.random.split(key, 16 + depth * 8))

    def tn(k, shape, std=0.02):
        return std * jax.random.truncated_normal(k, -2.0, 2.0, shape, F32)

    params = {
        # conv weight pre-flattened/transposed: (C*P*P, E); from PyTorch use
        # conv.weight (E,C,P,P).reshape(E,-1).T  (inner order c, kh, kw).
        "patch_w": tn(next(keys), (C * P * P, E)),
        "patch_b": jnp.zeros((E,), F32),
        "cls_token": tn(next(keys), (1, 1, E), std=1e-6),
        "pos_embed": tn(next(keys), (1, Np + 1, E)),
        "norm_g": jnp.ones((E,), F32),
        "norm_b": jnp.zeros((E,), F32),
        "mlp_head_w": tn(next(keys), (E, ncls + 1)),   # bias=False
        "head_w": tn(next(keys), (E, ncls)),
        "head_b": jnp.zeros((ncls,), F32),
        "blocks": [],
    }
    for _ in range(depth):
        params["blocks"].append({
            "ln1_g": jnp.ones((E,), F32),
            "ln1_b": jnp.zeros((E,), F32),
            "qkv_w": tn(next(keys), (E, 3 * E)),       # column order (3, nH, Dh)
            "qkv_b": jnp.zeros((3 * E,), F32),
            "proj_w": tn(next(keys), (E, E)),
            "proj_b": jnp.zeros((E,), F32),
            "ln2_g": jnp.ones((E,), F32),
            "ln2_b": jnp.zeros((E,), F32),
            "fc1_w": tn(next(keys), (E, hidden)),
            "fc1_b": jnp.zeros((hidden,), F32),
            "fc2_w": tn(next(keys), (hidden, E)),
            "fc2_b": jnp.zeros((E,), F32),
        })
    return params


def pack_params(params, cfg):
    """One-time layout prep: depth-stacked bf16 weights, padded heads, folded add slab."""
    E, nH, depth = cfg["embed_dim"], cfg["num_heads"], cfg["depth"]
    ncls = cfg["num_classes"]
    hidden = int(E * cfg["mlp_ratio"])
    Np = (cfg["img_size"] // cfg["patch"]) ** 2
    S = Np + 1
    S_pad = _round_up(S, 8)
    NC_PAD = _round_up(ncls, 128)
    NC1_PAD = _round_up(ncls + 1, 128)

    def stack(k):
        return jnp.stack([blk[k] for blk in params["blocks"]])

    # additive slab: row 0 = cls + pos[0]; rows 1..Np = conv bias + pos[1:];
    # padded rows stay 0 (padded keys are masked in-kernel, padded rows dropped).
    add = jnp.zeros((S_pad, E), F32)
    add = add.at[:S].set(params["pos_embed"][0])
    add = add.at[0].add(params["cls_token"][0, 0])
    add = add.at[1:S].add(params["patch_b"])

    mlph_w = jnp.zeros((E, NC1_PAD), F32).at[:, :ncls + 1].set(params["mlp_head_w"])
    head_w = jnp.zeros((E, NC_PAD), F32).at[:, :ncls].set(params["head_w"])
    head_b = jnp.zeros((1, NC_PAD), F32).at[0, :ncls].set(params["head_b"])

    packed = {
        "patch_w": params["patch_w"].astype(BF16),
        "add": add,
        "ln1_g": stack("ln1_g").reshape(depth, 1, E).astype(F32),
        "ln1_b": stack("ln1_b").reshape(depth, 1, E).astype(F32),
        "qkv_w": stack("qkv_w").astype(BF16),                       # (depth, E, 3E)
        "qkv_b": stack("qkv_b").reshape(depth, 1, 3 * E).astype(F32),
        "proj_w": stack("proj_w").astype(BF16),                     # (depth, E, E)
        "proj_b": stack("proj_b").reshape(depth, 1, E).astype(F32),
        "ln2_g": stack("ln2_g").reshape(depth, 1, E).astype(F32),
        "ln2_b": stack("ln2_b").reshape(depth, 1, E).astype(F32),
        "fc1_w": stack("fc1_w").astype(BF16),
        "fc1_b": stack("fc1_b").reshape(depth, 1, hidden).astype(F32),
        "fc2_w": stack("fc2_w").astype(BF16),
        "fc2_b": stack("fc2_b").reshape(depth, 1, E).astype(F32),
        "norm_g": params["norm_g"].reshape(1, E).astype(F32),
        "norm_b": params["norm_b"].reshape(1, E).astype(F32),
        "mlp_head_w": mlph_w.astype(BF16),
        "head_w": head_w.astype(BF16),
        "head_b": head_b,
    }
    return packed


# ------------------------------ model forward --------------------------------

def _const_spec(arr):
    zeros = (0,) * arr.ndim
    return pl.BlockSpec(arr.shape, lambda b, l, _z=zeros: _z)


def _layer_spec(arr):
    # arr: (depth, r, c) -> stream layer l's slice each grid step.
    return pl.BlockSpec((None,) + arr.shape[1:],
                        lambda b, l, _nd=arr.ndim: (l,) + (0,) * (_nd - 1))


def vit_forward(packed, x, cfg):
    B, C, H, W = x.shape
    P, E, nH = cfg["patch"], cfg["embed_dim"], cfg["num_heads"]
    Dh = E // nH
    depth, ncls = cfg["depth"], cfg["num_classes"]
    hP, wP = H // P, W // P
    Np = hP * wP
    S = Np + 1
    S_pad = _round_up(S, 8)
    CPP = C * P * P
    NC_PAD = _round_up(ncls, 128)
    NC1_PAD = _round_up(ncls + 1, 128)

    # im2col for the stride=patch conv (input-boundary layout op, done once):
    # row 0 is the (zero) cls slot, rows S..S_pad-1 are sublane padding.
    patches = (x.reshape(B, C, hP, P, wP, P)
                 .transpose(0, 2, 4, 1, 3, 5)
                 .reshape(B, Np, CPP)).astype(F32)
    patch_slab = jnp.zeros((B, S_pad, CPP), F32).at[:, 1:S, :].set(patches)

    kernel = functools.partial(_vit_kernel, num_heads=nH, head_dim=Dh,
                               seq=S, seq_pad=S_pad, eps=1e-6)

    in_specs = [pl.BlockSpec((None, S_pad, CPP), lambda b, l: (b, 0, 0))]
    for name, kind in _PACK_ORDER:
        arr = packed[name]
        in_specs.append(_layer_spec(arr) if kind == "layer" else _const_spec(arr))

    out_shape = (
        jax.ShapeDtypeStruct((B, 1, NC_PAD), F32),        # cls logits (padded lanes)
        jax.ShapeDtypeStruct((B, S_pad, NC1_PAD), F32),   # mlp_head (padded lanes/rows)
    )
    out_specs = (
        pl.BlockSpec((None, 1, NC_PAD), lambda b, l: (b, 0, 0)),
        pl.BlockSpec((None, S_pad, NC1_PAD), lambda b, l: (b, 0, 0)),
    )

    logits_full, att_full = pl.pallas_call(
        kernel,
        grid=(B, depth),
        in_specs=in_specs,
        out_specs=out_specs,
        out_shape=out_shape,
        scratch_shapes=[pltpu.VMEM((S_pad, E), F32)],      # residual stream, carried over depth
        compiler_params=pltpu.CompilerParams(
            dimension_semantics=("parallel", "arbitrary"),
            vmem_limit_bytes=48 * 1024 * 1024),
    )(patch_slab, *[packed[k] for k, _ in _PACK_ORDER])

    logits = logits_full[:, 0, :ncls]        # global_pool == 'token' (cls row)
    att = att_full[:, 1:S, :ncls + 1]        # mlp_head(x[:, 1:])
    return logits, att, att                  # matches (x, att_temp, quantized)


# ----------------------------------- main -------------------------------------

if __name__ == "__main__":
    cfg = dict(
        img_size=16, patch=4, in_chans=3, embed_dim=32,
        depth=2, num_heads=4, mlp_ratio=4.0, num_classes=10,
    )
    root = jax.random.PRNGKey(0)
    k_params, k_x = jax.random.split(root)
    params = init_params(k_params, cfg)
    packed = pack_params(params, cfg)

    B = 2
    x = jax.random.normal(
        k_x, (B, cfg["in_chans"], cfg["img_size"], cfg["img_size"]), F32)

    fwd = jax.jit(lambda p, inp: vit_forward(p, inp, cfg))
    logits, att, quantized = fwd(packed, x)
    jax.block_until_ready((logits, att, quantized))

    Np = (cfg["img_size"] // cfg["patch"]) ** 2
    assert logits.shape == (B, cfg["num_classes"])
    assert att.shape == (B, Np, cfg["num_classes"] + 1)
    assert quantized.shape == att.shape
    assert bool(jnp.all(jnp.isfinite(logits))) and bool(jnp.all(jnp.isfinite(att)))
    print("KERNEL_OK")
</pallas_src>

<mosaic_0001>
module attributes {stable_mosaic.version = 11 : i64} {
  func.func @_vit_kernel(%arg0: i32, %arg1: i32, %arg2: memref<1x24x48xf32, #tpu.memory_space<vmem>>, %arg3: memref<48x32xbf16, #tpu.memory_space<vmem>>, %arg4: memref<24x32xf32, #tpu.memory_space<vmem>>, %arg5: memref<1x1x32xf32, #tpu.memory_space<vmem>>, %arg6: memref<1x1x32xf32, #tpu.memory_space<vmem>>, %arg7: memref<1x32x96xbf16, #tpu.memory_space<vmem>>, %arg8: memref<1x1x96xf32, #tpu.memory_space<vmem>>, %arg9: memref<1x32x32xbf16, #tpu.memory_space<vmem>>, %arg10: memref<1x1x32xf32, #tpu.memory_space<vmem>>, %arg11: memref<1x1x32xf32, #tpu.memory_space<vmem>>, %arg12: memref<1x1x32xf32, #tpu.memory_space<vmem>>, %arg13: memref<1x32x128xbf16, #tpu.memory_space<vmem>>, %arg14: memref<1x1x128xf32, #tpu.memory_space<vmem>>, %arg15: memref<1x128x32xbf16, #tpu.memory_space<vmem>>, %arg16: memref<1x1x32xf32, #tpu.memory_space<vmem>>, %arg17: memref<1x32xf32, #tpu.memory_space<vmem>>, %arg18: memref<1x32xf32, #tpu.memory_space<vmem>>, %arg19: memref<32x128xbf16, #tpu.memory_space<vmem>>, %arg20: memref<32x128xbf16, #tpu.memory_space<vmem>>, %arg21: memref<1x128xf32, #tpu.memory_space<vmem>>, %arg22: memref<1x1x128xf32, #tpu.memory_space<vmem>>, %arg23: memref<1x24x128xf32, #tpu.memory_space<vmem>>, %arg24: memref<24x32xf32, #tpu.memory_space<vmem>>) attributes {dimension_semantics = [#tpu.dimension_semantics<parallel>, #tpu.dimension_semantics<arbitrary>], iteration_bounds = array<i64: 2, 2>, scalar_prefetch = 0 : i64, scratch_operands = 1 : i64, tpu.core_type = #tpu.core_type<tc>, window_params = [{transform_indices = @transform_0, window_bounds = array<i64: 1, 24, 48>}, {pipeline_mode = #tpu.pipeline_mode<synchronous>, transform_indices = @transform_1, window_bounds = array<i64: 48, 32>}, {pipeline_mode = #tpu.pipeline_mode<synchronous>, transform_indices = @transform_2, window_bounds = array<i64: 24, 32>}, {transform_indices = @transform_3, window_bounds = array<i64: 1, 1, 32>}, {transform_indices = @transform_4, window_bounds = array<i64: 1, 1, 32>}, {transform_indices = @transform_5, window_bounds = array<i64: 1, 32, 96>}, {transform_indices = @transform_6, window_bounds = array<i64: 1, 1, 96>}, {transform_indices = @transform_7, window_bounds = array<i64: 1, 32, 32>}, {transform_indices = @transform_8, window_bounds = array<i64: 1, 1, 32>}, {transform_indices = @transform_9, window_bounds = array<i64: 1, 1, 32>}, {transform_indices = @transform_10, window_bounds = array<i64: 1, 1, 32>}, {transform_indices = @transform_11, window_bounds = array<i64: 1, 32, 128>}, {transform_indices = @transform_12, window_bounds = array<i64: 1, 1, 128>}, {transform_indices = @transform_13, window_bounds = array<i64: 1, 128, 32>}, {transform_indices = @transform_14, window_bounds = array<i64: 1, 1, 32>}, {pipeline_mode = #tpu.pipeline_mode<synchronous>, transform_indices = @transform_15, window_bounds = array<i64: 1, 32>}, {pipeline_mode = #tpu.pipeline_mode<synchronous>, transform_indices = @transform_16, window_bounds = array<i64: 1, 32>}, {pipeline_mode = #tpu.pipeline_mode<synchronous>, transform_indices = @transform_17, window_bounds = array<i64: 32, 128>}, {pipeline_mode = #tpu.pipeline_mode<synchronous>, transform_indices = @transform_18, window_bounds = array<i64: 32, 128>}, {pipeline_mode = #tpu.pipeline_mode<synchronous>, transform_indices = @transform_19, window_bounds = array<i64: 1, 128>}, {transform_indices = @transform_20, window_bounds = array<i64: 1, 1, 128>}, {transform_indices = @transform_21, window_bounds = array<i64: 1, 24, 128>}]} {
    %c0_i32 = arith.constant 0 : i32
    %0 = arith.cmpi eq, %arg1, %c0_i32 : i32
    %1 = arith.extui %0 : i1 to i32
    %c0_i32_0 = arith.constant 0 : i32
    %2 = arith.cmpi ne, %1, %c0_i32_0 : i32
    scf.if %2 {
      %c0_75 = arith.constant 0 : index
      %c0_76 = arith.constant 0 : index
      %c0_77 = arith.constant 0 : index
      %194 = vector.load %arg2[%c0_75, %c0_76, %c0_77] : memref<1x24x48xf32, #tpu.memory_space<vmem>>, vector<1x24x48xf32>
      %195 = vector.shape_cast %194 : vector<1x24x48xf32> to vector<24x48xf32>
      %196 = arith.truncf %195 : vector<24x48xf32> to vector<24x48xbf16>
      %c0_78 = arith.constant 0 : index
      %c0_79 = arith.constant 0 : index
      %197 = vector.load %arg3[%c0_78, %c0_79] : memref<48x32xbf16, #tpu.memory_space<vmem>>, vector<48x32xbf16>
      %cst_80 = arith.constant dense<0.000000e+00> : vector<24x32xf32>
      %198 = tpu.matmul %196, %197, %cst_80 {dimension_numbers = #tpu.dot_dimension_numbers<[1], [0], [0], [1], [0, 0, 1, 1], [], []>} : vector<24x48xbf16>, vector<48x32xbf16>, vector<24x32xf32> -> vector<24x32xf32>
      %c0_81 = arith.constant 0 : index
      %c0_82 = arith.constant 0 : index
      %199 = vector.load %arg4[%c0_81, %c0_82] : memref<24x32xf32, #tpu.memory_space<vmem>>, vector<24x32xf32>
      %200 = arith.addf %198, %199 : vector<24x32xf32>
      %c0_83 = arith.constant 0 : index
      %c0_84 = arith.constant 0 : index
      %201 = vector.load %arg24[%c0_83, %c0_84] : memref<24x32xf32, #tpu.memory_space<vmem>>, vector<24x32xf32>
      tpu.vector_store %arg24[%c0_83, %c0_84], %200 {strides = array<i32>} : memref<24x32xf32, #tpu.memory_space<vmem>>, vector<24x32xf32>,
    } else {
    }
    %c0 = arith.constant 0 : index
    %c0_1 = arith.constant 0 : index
    %3 = vector.load %arg24[%c0, %c0_1] : memref<24x32xf32, #tpu.memory_space<vmem>>, vector<24x32xf32>
    %c0_2 = arith.constant 0 : index
    %c0_3 = arith.constant 0 : index
    %c0_4 = arith.constant 0 : index
    %4 = vector.load %arg5[%c0_2, %c0_3, %c0_4] : memref<1x1x32xf32, #tpu.memory_space<vmem>>, vector<1x1x32xf32>
    %5 = vector.shape_cast %4 : vector<1x1x32xf32> to vector<1x32xf32>
    %c0_5 = arith.constant 0 : index
    %c0_6 = arith.constant 0 : index
    %c0_7 = arith.constant 0 : index
    %6 = vector.load %arg6[%c0_5, %c0_6, %c0_7] : memref<1x1x32xf32, #tpu.memory_space<vmem>>, vector<1x1x32xf32>
    %7 = vector.shape_cast %6 : vector<1x1x32xf32> to vector<1x32xf32>
    %cst = arith.constant dense<0.000000e+00> : vector<24xf32>
    %8 = vector.multi_reduction <add>, %3, %cst [1] : vector<24x32xf32> to vector<24xf32>
    %9 = vector.shape_cast %8 : vector<24xf32> to vector<24x1xf32>
    %cst_8 = arith.constant 3.200000e+01 : f32
    %10 = vector.broadcast %cst_8 : f32 to vector<24x1xf32>
    %11 = arith.divf %9, %10 : vector<24x1xf32>
    %12 = vector.broadcast %11 : vector<24x1xf32> to vector<24x32xf32>
    %13 = arith.subf %3, %12 : vector<24x32xf32>
    %14 = arith.mulf %13, %13 : vector<24x32xf32>
    %cst_9 = arith.constant dense<0.000000e+00> : vector<24xf32>
    %15 = vector.multi_reduction <add>, %14, %cst_9 [1] : vector<24x32xf32> to vector<24xf32>
    %16 = vector.shape_cast %15 : vector<24xf32> to vector<24x1xf32>
    %cst_10 = arith.constant 3.200000e+01 : f32
    %17 = vector.broadcast %cst_10 : f32 to vector<24x1xf32>
    %18 = arith.divf %16, %17 : vector<24x1xf32>
    %cst_11 = arith.constant 9.99999997E-7 : f32
    %19 = vector.broadcast %cst_11 : f32 to vector<24x1xf32>
    %20 = arith.addf %18, %19 : vector<24x1xf32>
    %21 = math.rsqrt %20 : vector<24x1xf32>
    %22 = vector.broadcast %21 : vector<24x1xf32> to vector<24x32xf32>
    %23 = arith.mulf %13, %22 : vector<24x32xf32>
    %24 = vector.broadcast %5 : vector<1x32xf32> to vector<24x32xf32>
    %25 = arith.mulf %23, %24 : vector<24x32xf32>
    %26 = vector.broadcast %7 : vector<1x32xf32> to vector<24x32xf32>
    %27 = arith.addf %25, %26 : vector<24x32xf32>
    %28 = arith.truncf %27 : vector<24x32xf32> to vector<24x32xbf16>
    %c0_12 = arith.constant 0 : index
    %c0_13 = arith.constant 0 : index
    %c0_14 = arith.constant 0 : index
    %29 = vector.load %arg7[%c0_12, %c0_13, %c0_14] : memref<1x32x96xbf16, #tpu.memory_space<vmem>>, vector<1x32x96xbf16>
    %30 = vector.shape_cast %29 : vector<1x32x96xbf16> to vector<32x96xbf16>
    %cst_15 = arith.constant dense<0.000000e+00> : vector<24x96xf32>
    %31 = tpu.matmul %28, %30, %cst_15 {dimension_numbers = #tpu.dot_dimension_numbers<[1], [0], [0], [1], [0, 0, 1, 1], [], []>} : vector<24x32xbf16>, vector<32x96xbf16>, vector<24x96xf32> -> vector<24x96xf32>
    %c0_16 = arith.constant 0 : index
    %c0_17 = arith.constant 0 : index
    %c0_18 = arith.constant 0 : index
    %32 = vector.load %arg8[%c0_16, %c0_17, %c0_18] : memref<1x1x96xf32, #tpu.memory_space<vmem>>, vector<1x1x96xf32>
    %33 = vector.shape_cast %32 : vector<1x1x96xf32> to vector<1x96xf32>
    %34 = vector.broadcast %33 : vector<1x96xf32> to vector<24x96xf32>
    %35 = arith.addf %31, %34 : vector<24x96xf32>
    %36 = vector.extract_strided_slice %35 {offsets = [0, 0], sizes = [24, 32], strides = [1, 1]} : vector<24x96xf32> to vector<24x32xf32>
    %37 = vector.extract_strided_slice %36 {offsets = [0, 0], sizes = [24, 8], strides = [1, 1]} : vector<24x32xf32> to vector<24x8xf32>
    %38 = vector.extract_strided_slice %36 {offsets = [0, 8], sizes = [24, 8], strides = [1, 1]} : vector<24x32xf32> to vector<24x8xf32>
    %39 = vector.extract_strided_slice %36 {offsets = [0, 16], sizes = [24, 8], strides = [1, 1]} : vector<24x32xf32> to vector<24x8xf32>
    %40 = vector.extract_strided_slice %36 {offsets = [0, 24], sizes = [24, 8], strides = [1, 1]} : vector<24x32xf32> to vector<24x8xf32>
    %41 = vector.shape_cast %37 : vector<24x8xf32> to vector<1x24x8xf32>
    %42 = vector.shape_cast %38 : vector<24x8xf32> to vector<1x24x8xf32>
    %43 = vector.shape_cast %39 : vector<24x8xf32> to vector<1x24x8xf32>
    %44 = vector.shape_cast %40 : vector<24x8xf32> to vector<1x24x8xf32>
    %45 = tpu.concatenate %41, %42, %43, %44 in 0 : vector<1x24x8xf32>, vector<1x24x8xf32>, vector<1x24x8xf32>, vector<1x24x8xf32> -> vector<4x24x8xf32>
    %46 = arith.truncf %45 : vector<4x24x8xf32> to vector<4x24x8xbf16>
    %47 = vector.extract_strided_slice %35 {offsets = [0, 32], sizes = [24, 32], strides = [1, 1]} : vector<24x96xf32> to vector<24x32xf32>
    %48 = vector.extract_strided_slice %47 {offsets = [0, 0], sizes = [24, 8], strides = [1, 1]} : vector<24x32xf32> to vector<24x8xf32>
    %49 = vector.extract_strided_slice %47 {offsets = [0, 8], sizes = [24, 8], strides = [1, 1]} : vector<24x32xf32> to vector<24x8xf32>
    %50 = vector.extract_strided_slice %47 {offsets = [0, 16], sizes = [24, 8], strides = [1, 1]} : vector<24x32xf32> to vector<24x8xf32>
    %51 = vector.extract_strided_slice %47 {offsets = [0, 24], sizes = [24, 8], strides = [1, 1]} : vector<24x32xf32> to vector<24x8xf32>
    %52 = vector.shape_cast %48 : vector<24x8xf32> to vector<1x24x8xf32>
    %53 = vector.shape_cast %49 : vector<24x8xf32> to vector<1x24x8xf32>
    %54 = vector.shape_cast %50 : vector<24x8xf32> to vector<1x24x8xf32>
    %55 = vector.shape_cast %51 : vector<24x8xf32> to vector<1x24x8xf32>
    %56 = tpu.concatenate %52, %53, %54, %55 in 0 : vector<1x24x8xf32>, vector<1x24x8xf32>, vector<1x24x8xf32>, vector<1x24x8xf32> -> vector<4x24x8xf32>
    %57 = arith.truncf %56 : vector<4x24x8xf32> to vector<4x24x8xbf16>
    %58 = vector.extract_strided_slice %35 {offsets = [0, 64], sizes = [24, 32], strides = [1, 1]} : vector<24x96xf32> to vector<24x32xf32>
    %59 = vector.extract_strided_slice %58 {offsets = [0, 0], sizes = [24, 8], strides = [1, 1]} : vector<24x32xf32> to vector<24x8xf32>
    %60 = vector.extract_strided_slice %58 {offsets = [0, 8], sizes = [24, 8], strides = [1, 1]} : vector<24x32xf32> to vector<24x8xf32>
    %61 = vector.extract_strided_slice %58 {offsets = [0, 16], sizes = [24, 8], strides = [1, 1]} : vector<24x32xf32> to vector<24x8xf32>
    %62 = vector.extract_strided_slice %58 {offsets = [0, 24], sizes = [24, 8], strides = [1, 1]} : vector<24x32xf32> to vector<24x8xf32>
    %63 = vector.shape_cast %59 : vector<24x8xf32> to vector<1x24x8xf32>
    %64 = vector.shape_cast %60 : vector<24x8xf32> to vector<1x24x8xf32>
    %65 = vector.shape_cast %61 : vector<24x8xf32> to vector<1x24x8xf32>
    %66 = vector.shape_cast %62 : vector<24x8xf32> to vector<1x24x8xf32>
    %67 = tpu.concatenate %63, %64, %65, %66 in 0 : vector<1x24x8xf32>, vector<1x24x8xf32>, vector<1x24x8xf32>, vector<1x24x8xf32> -> vector<4x24x8xf32>
    %68 = arith.truncf %67 : vector<4x24x8xf32> to vector<4x24x8xbf16>
    "tpu.trace_start"() <{level = 10 : i32, message = "hqd,hkd->hqk"}> : () -> ()
    %cst_19 = arith.constant dense<0.000000e+00> : vector<4x24x24xf32>
    %69 = tpu.matmul %46, %57, %cst_19 {dimension_numbers = #tpu.dot_dimension_numbers<[2], [2], [1], [1], [0, 0, 0, 1, 1, 1], [0], [0]>} : vector<4x24x8xbf16>, vector<4x24x8xbf16>, vector<4x24x24xf32> -> vector<4x24x24xf32>
    "tpu.trace_stop"() : () -> ()
    %cst_20 = arith.constant 0.353553385 : f32
    %70 = vector.broadcast %cst_20 : f32 to vector<4x24x24xf32>
    %71 = arith.mulf %69, %70 : vector<4x24x24xf32>
    %72 = tpu.iota {dimensions = array<i32: 2>} : vector<1x1x24xi32>
    %c17_i32 = arith.constant 17 : i32
    %73 = vector.broadcast %c17_i32 : i32 to vector<1x1x24xi32>
    %74 = arith.cmpi slt, %72, %73 : vector<1x1x24xi32>
    %cst_21 = arith.constant 0.000000e+00 : f32
    %cst_22 = arith.constant -1.000000e+30 : f32
    %75 = vector.broadcast %cst_21 : f32 to vector<1x1x24xf32>
    %76 = vector.broadcast %cst_22 : f32 to vector<1x1x24xf32>
    %77 = arith.select %74, %75, %76 : vector<1x1x24xi1>, vector<1x1x24xf32>
    %78 = vector.broadcast %77 : vector<1x1x24xf32> to vector<4x24x24xf32>
    %79 = arith.addf %71, %78 : vector<4x24x24xf32>
    %cst_23 = arith.constant dense<0xFF800000> : vector<4x24xf32>
    %80 = vector.multi_reduction <maximumf>, %79, %cst_23 [2] : vector<4x24x24xf32> to vector<4x24xf32>
    %81 = vector.shape_cast %80 : vector<4x24xf32> to vector<4x24x1xf32>
    %82 = vector.broadcast %81 : vector<4x24x1xf32> to vector<4x24x24xf32>
    %83 = arith.subf %79, %82 : vector<4x24x24xf32>
    %84 = math.exp %83 : vector<4x24x24xf32>
    %cst_24 = arith.constant dense<0.000000e+00> : vector<4x24xf32>
    %85 = vector.multi_reduction <add>, %84, %cst_24 [2] : vector<4x24x24xf32> to vector<4x24xf32>
    %86 = vector.shape_cast %85 : vector<4x24xf32> to vector<4x24x1xf32>
    %87 = tpu.reciprocal %86 {approx = true} : vector<4x24x1xf32> -> vector<4x24x1xf32>
    %88 = vector.broadcast %87 : vector<4x24x1xf32> to vector<4x24x24xf32>
    %89 = arith.mulf %84, %88 : vector<4x24x24xf32>
    %90 = arith.truncf %89 : vector<4x24x24xf32> to vector<4x24x24xbf16>
    "tpu.trace_start"() <{level = 10 : i32, message = "hqk,hkd->hqd"}> : () -> ()
    %cst_25 = arith.constant dense<0.000000e+00> : vector<4x24x8xf32>
    %91 = tpu.matmul %90, %68, %cst_25 {dimension_numbers = #tpu.dot_dimension_numbers<[2], [1], [1], [2], [0, 0, 0, 1, 1, 2], [0], [0]>} : vector<4x24x24xbf16>, vector<4x24x8xbf16>, vector<4x24x8xf32> -> vector<4x24x8xf32>
    "tpu.trace_stop"() : () -> ()
    %92 = vector.extract_strided_slice %91 {offsets = [0, 0, 0], sizes = [1, 24, 8], strides = [1, 1, 1]} : vector<4x24x8xf32> to vector<1x24x8xf32>
    %93 = vector.shape_cast %92 : vector<1x24x8xf32> to vector<24x8xf32>
    %94 = vector.extract_strided_slice %91 {offsets = [1, 0, 0], sizes = [1, 24, 8], strides = [1, 1, 1]} : vector<4x24x8xf32> to vector<1x24x8xf32>
    %95 = vector.shape_cast %94 : vector<1x24x8xf32> to vector<24x8xf32>
    %96 = vector.extract_strided_slice %91 {offsets = [2, 0, 0], sizes = [1, 24, 8], strides = [1, 1, 1]} : vector<4x24x8xf32> to vector<1x24x8xf32>
    %97 = vector.shape_cast %96 : vector<1x24x8xf32> to vector<24x8xf32>
    %98 = vector.extract_strided_slice %91 {offsets = [3, 0, 0], sizes = [1, 24, 8], strides = [1, 1, 1]} : vector<4x24x8xf32> to vector<1x24x8xf32>
    %99 = vector.shape_cast %98 : vector<1x24x8xf32> to vector<24x8xf32>
    %100 = tpu.concatenate %93, %95, %97, %99 in 1 : vector<24x8xf32>, vector<24x8xf32>, vector<24x8xf32>, vector<24x8xf32> -> vector<24x32xf32>
    %101 = arith.truncf %100 : vector<24x32xf32> to vector<24x32xbf16>
    %c0_26 = arith.constant 0 : index
    %c0_27 = arith.constant 0 : index
    %c0_28 = arith.constant 0 : index
    %102 = vector.load %arg9[%c0_26, %c0_27, %c0_28] : memref<1x32x32xbf16, #tpu.memory_space<vmem>>, vector<1x32x32xbf16>
    %103 = vector.shape_cast %102 : vector<1x32x32xbf16> to vector<32x32xbf16>
    %cst_29 = arith.constant dense<0.000000e+00> : vector<24x32xf32>
    %104 = tpu.matmul %101, %103, %cst_29 {dimension_numbers = #tpu.dot_dimension_numbers<[1], [0], [0], [1], [0, 0, 1, 1], [], []>} : vector<24x32xbf16>, vector<32x32xbf16>, vector<24x32xf32> -> vector<24x32xf32>
    %c0_30 = arith.constant 0 : index
    %c0_31 = arith.constant 0 : index
    %c0_32 = arith.constant 0 : index
    %105 = vector.load %arg10[%c0_30, %c0_31, %c0_32] : memref<1x1x32xf32, #tpu.memory_space<vmem>>, vector<1x1x32xf32>
    %106 = vector.shape_cast %105 : vector<1x1x32xf32> to vector<1x32xf32>
    %107 = vector.broadcast %106 : vector<1x32xf32> to vector<24x32xf32>
    %108 = arith.addf %104, %107 : vector<24x32xf32>
    %109 = arith.addf %3, %108 : vector<24x32xf32>
    %c0_33 = arith.constant 0 : index
    %c0_34 = arith.constant 0 : index
    %c0_35 = arith.constant 0 : index
    %110 = vector.load %arg11[%c0_33, %c0_34, %c0_35] : memref<1x1x32xf32, #tpu.memory_space<vmem>>, vector<1x1x32xf32>
    %111 = vector.shape_cast %110 : vector<1x1x32xf32> to vector<1x32xf32>
    %c0_36 = arith.constant 0 : index
    %c0_37 = arith.constant 0 : index
    %c0_38 = arith.constant 0 : index
    %112 = vector.load %arg12[%c0_36, %c0_37, %c0_38] : memref<1x1x32xf32, #tpu.memory_space<vmem>>, vector<1x1x32xf32>
    %113 = vector.shape_cast %112 : vector<1x1x32xf32> to vector<1x32xf32>
    %cst_39 = arith.constant dense<0.000000e+00> : vector<24xf32>
    %114 = vector.multi_reduction <add>, %109, %cst_39 [1] : vector<24x32xf32> to vector<24xf32>
    %115 = vector.shape_cast %114 : vector<24xf32> to vector<24x1xf32>
    %cst_40 = arith.constant 3.200000e+01 : f32
    %116 = vector.broadcast %cst_40 : f32 to vector<24x1xf32>
    %117 = arith.divf %115, %116 : vector<24x1xf32>
    %118 = vector.broadcast %117 : vector<24x1xf32> to vector<24x32xf32>
    %119 = arith.subf %109, %118 : vector<24x32xf32>
    %120 = arith.mulf %119, %119 : vector<24x32xf32>
    %cst_41 = arith.constant dense<0.000000e+00> : vector<24xf32>
    %121 = vector.multi_reduction <add>, %120, %cst_41 [1] : vector<24x32xf32> to vector<24xf32>
    %122 = vector.shape_cast %121 : vector<24xf32> to vector<24x1xf32>
    %cst_42 = arith.constant 3.200000e+01 : f32
    %123 = vector.broadcast %cst_42 : f32 to vector<24x1xf32>
    %124 = arith.divf %122, %123 : vector<24x1xf32>
    %cst_43 = arith.constant 9.99999997E-7 : f32
    %125 = vector.broadcast %cst_43 : f32 to vector<24x1xf32>
    %126 = arith.addf %124, %125 : vector<24x1xf32>
    %127 = math.rsqrt %126 : vector<24x1xf32>
    %128 = vector.broadcast %127 : vector<24x1xf32> to vector<24x32xf32>
    %129 = arith.mulf %119, %128 : vector<24x32xf32>
    %130 = vector.broadcast %111 : vector<1x32xf32> to vector<24x32xf32>
    %131 = arith.mulf %129, %130 : vector<24x32xf32>
    %132 = vector.broadcast %113 : vector<1x32xf32> to vector<24x32xf32>
    %133 = arith.addf %131, %132 : vector<24x32xf32>
    %134 = arith.truncf %133 : vector<24x32xf32> to vector<24x32xbf16>
    %c0_44 = arith.constant 0 : index
    %c0_45 = arith.constant 0 : index
    %c0_46 = arith.constant 0 : index
    %135 = vector.load %arg13[%c0_44, %c0_45, %c0_46] : memref<1x32x128xbf16, #tpu.memory_space<vmem>>, vector<1x32x128xbf16>
    %136 = vector.shape_cast %135 : vector<1x32x128xbf16> to vector<32x128xbf16>
    %cst_47 = arith.constant dense<0.000000e+00> : vector<24x128xf32>
    %137 = tpu.matmul %134, %136, %cst_47 {dimension_numbers = #tpu.dot_dimension_numbers<[1], [0], [0], [1], [0, 0, 1, 1], [], []>} : vector<24x32xbf16>, vector<32x128xbf16>, vector<24x128xf32> -> vector<24x128xf32>
    %c0_48 = arith.constant 0 : index
    %c0_49 = arith.constant 0 : index
    %c0_50 = arith.constant 0 : index
    %138 = vector.load %arg14[%c0_48, %c0_49, %c0_50] : memref<1x1x128xf32, #tpu.memory_space<vmem>>, vector<1x1x128xf32>
    %139 = vector.shape_cast %138 : vector<1x1x128xf32> to vector<1x128xf32>
    %140 = vector.broadcast %139 : vector<1x128xf32> to vector<24x128xf32>
    %141 = arith.addf %137, %140 : vector<24x128xf32>
    %cst_51 = arith.constant 5.000000e-01 : f32
    %142 = vector.broadcast %cst_51 : f32 to vector<24x128xf32>
    %143 = arith.mulf %142, %141 : vector<24x128xf32>
    %cst_52 = arith.constant 0.707106769 : f32
    %144 = vector.broadcast %cst_52 : f32 to vector<24x128xf32>
    %145 = arith.mulf %141, %144 : vector<24x128xf32>
    %146 = math.absf %145 : vector<24x128xf32>
    %cst_53 = arith.constant 0.327591091 : f32
    %147 = vector.broadcast %cst_53 : f32 to vector<24x128xf32>
    %148 = arith.mulf %147, %146 : vector<24x128xf32>
    %cst_54 = arith.constant 1.000000e+00 : f32
    %149 = vector.broadcast %cst_54 : f32 to vector<24x128xf32>
    %150 = arith.addf %149, %148 : vector<24x128xf32>
    %151 = tpu.reciprocal %150 {approx = true} : vector<24x128xf32> -> vector<24x128xf32>
    %cst_55 = arith.constant 1.06140542 : f32
    %152 = vector.broadcast %cst_55 : f32 to vector<24x128xf32>
    %153 = arith.mulf %152, %151 : vector<24x128xf32>
    %cst_56 = arith.constant -1.45315206 : f32
    %154 = vector.broadcast %cst_56 : f32 to vector<24x128xf32>
    %155 = arith.addf %153, %154 : vector<24x128xf32>
    %156 = arith.mulf %155, %151 : vector<24x128xf32>
    %cst_57 = arith.constant 1.42141378 : f32
    %157 = vector.broadcast %cst_57 : f32 to vector<24x128xf32>
    %158 = arith.addf %156, %157 : vector<24x128xf32>
    %159 = arith.mulf %158, %151 : vector<24x128xf32>
    %cst_58 = arith.constant -0.284496725 : f32
    %160 = vector.broadcast %cst_58 : f32 to vector<24x128xf32>
    %161 = arith.addf %159, %160 : vector<24x128xf32>
    %162 = arith.mulf %161, %151 : vector<24x128xf32>
    %cst_59 = arith.constant 0.254829586 : f32
    %163 = vector.broadcast %cst_59 : f32 to vector<24x128xf32>
    %164 = arith.addf %162, %163 : vector<24x128xf32>
    %165 = arith.mulf %164, %151 : vector<24x128xf32>
    %cst_60 = arith.constant 0.000000e+00 : f32
    %166 = vector.broadcast %cst_60 : f32 to vector<24x128xf32>
    %167 = arith.subf %166, %146 : vector<24x128xf32>
    %168 = arith.mulf %167, %146 : vector<24x128xf32>
    %169 = math.exp %168 : vector<24x128xf32>
    %170 = arith.mulf %165, %169 : vector<24x128xf32>
    %cst_61 = arith.constant 1.000000e+00 : f32
    %171 = vector.broadcast %cst_61 : f32 to vector<24x128xf32>
    %172 = arith.subf %171, %170 : vector<24x128xf32>
    %cst_62 = arith.constant 0.000000e+00 : f32
    %173 = vector.broadcast %cst_62 : f32 to vector<24x128xf32>
    %174 = arith.cmpf olt, %145, %173 : vector<24x128xf32>
    %cst_63 = arith.constant 0.000000e+00 : f32
    %175 = vector.broadcast %cst_63 : f32 to vector<24x128xf32>
    %176 = arith.subf %175, %172 : vector<24x128xf32>
    %177 = arith.select %174, %176, %172 : vector<24x128xi1>, vector<24x128xf32>
    %cst_64 = arith.constant 1.000000e+00 : f32
    %178 = vector.broadcast %cst_64 : f32 to vector<24x128xf32>
    %179 = arith.addf %178, %177 : vector<24x128xf32>
    %180 = arith.mulf %143, %179 : vector<24x128xf32>
    %181 = arith.truncf %180 : vector<24x128xf32> to vector<24x128xbf16>
    %c0_65 = arith.constant 0 : index
    %c0_66 = arith.constant 0 : index
    %c0_67 = arith.constant 0 : index
    %182 = vector.load %arg15[%c0_65, %c0_66, %c0_67] : memref<1x128x32xbf16, #tpu.memory_space<vmem>>, vector<1x128x32xbf16>
    %183 = vector.shape_cast %182 : vector<1x128x32xbf16> to vector<128x32xbf16>
    %cst_68 = arith.constant dense<0.000000e+00> : vector<24x32xf32>
    %184 = tpu.matmul %181, %183, %cst_68 {dimension_numbers = #tpu.dot_dimension_numbers<[1], [0], [0], [1], [0, 0, 1, 1], [], []>} : vector<24x128xbf16>, vector<128x32xbf16>, vector<24x32xf32> -> vector<24x32xf32>
    %c0_69 = arith.constant 0 : index
    %c0_70 = arith.constant 0 : index
    %c0_71 = arith.constant 0 : index
    %185 = vector.load %arg16[%c0_69, %c0_70, %c0_71] : memref<1x1x32xf32, #tpu.memory_space<vmem>>, vector<1x1x32xf32>
    %186 = vector.shape_cast %185 : vector<1x1x32xf32> to vector<1x32xf32>
    %187 = vector.broadcast %186 : vector<1x32xf32> to vector<24x32xf32>
    %188 = arith.addf %184, %187 : vector<24x32xf32>
    %189 = arith.addf %109, %188 : vector<24x32xf32>
    %c0_72 = arith.constant 0 : index
    %c0_73 = arith.constant 0 : index
    %190 = vector.load %arg24[%c0_72, %c0_73] : memref<24x32xf32, #tpu.memory_space<vmem>>, vector<24x32xf32>
    tpu.vector_store %arg24[%c0_72, %c0_73], %189 {strides = array<i32>} : memref<24x32xf32, #tpu.memory_space<vmem>>, vector<24x32xf32>,
    %c1_i32 = arith.constant 1 : i32
    %191 = arith.cmpi eq, %arg1, %c1_i32 : i32
    %192 = arith.extui %191 : i1 to i32
    %c0_i32_74 = arith.constant 0 : i32
    %193 = arith.cmpi ne, %192, %c0_i32_74 : i32
    scf.if %193 {
      %194 = arith.truncf %189 : vector<24x32xf32> to vector<24x32xbf16>
      %c0_75 = arith.constant 0 : index
      %c0_76 = arith.constant 0 : index
      %195 = vector.load %arg19[%c0_75, %c0_76] : memref<32x128xbf16, #tpu.memory_space<vmem>>, vector<32x128xbf16>
      %cst_77 = arith.constant dense<0.000000e+00> : vector<24x128xf32>
      %196 = tpu.matmul %194, %195, %cst_77 {dimension_numbers = #tpu.dot_dimension_numbers<[1], [0], [0], [1], [0, 0, 1, 1], [], []>} : vector<24x32xbf16>, vector<32x128xbf16>, vector<24x128xf32> -> vector<24x128xf32>
      %c0_78 = arith.constant 0 : index
      %c0_79 = arith.constant 0 : index
      %c0_80 = arith.constant 0 : index
      %197 = vector.load %arg23[%c0_78, %c0_79, %c0_80] : memref<1x24x128xf32, #tpu.memory_space<vmem>>, vector<1x24x128xf32>
      %198 = vector.shape_cast %197 : vector<1x24x128xf32> to vector<24x128xf32>
      %199 = vector.shape_cast %196 : vector<24x128xf32> to vector<1x24x128xf32>
      tpu.vector_store %arg23[%c0_78, %c0_79, %c0_80], %199 {strides = array<i32>} : memref<1x24x128xf32, #tpu.memory_space<vmem>>, vector<1x24x128xf32>,
      %200 = vector.extract_strided_slice %189 {offsets = [0, 0], sizes = [1, 32], strides = [1, 1]} : vector<24x32xf32> to vector<1x32xf32>
      %c0_81 = arith.constant 0 : index
      %c0_82 = arith.constant 0 : index
      %201 = vector.load %arg17[%c0_81, %c0_82] : memref<1x32xf32, #tpu.memory_space<vmem>>, vector<1x32xf32>
      %c0_83 = arith.constant 0 : index
      %c0_84 = arith.constant 0 : index
      %202 = vector.load %arg18[%c0_83, %c0_84] : memref<1x32xf32, #tpu.memory_space<vmem>>, vector<1x32xf32>
      %cst_85 = arith.constant dense<0.000000e+00> : vector<1xf32>
      %203 = vector.multi_reduction <add>, %200, %cst_85 [1] : vector<1x32xf32> to vector<1xf32>
      %204 = vector.shape_cast %203 : vector<1xf32> to vector<1x1xf32>
      %cst_86 = arith.constant 3.200000e+01 : f32
      %205 = vector.broadcast %cst_86 : f32 to vector<1x1xf32>
      %206 = arith.divf %204, %205 : vector<1x1xf32>
      %207 = vector.broadcast %206 : vector<1x1xf32> to vector<1x32xf32>
      %208 = arith.subf %200, %207 : vector<1x32xf32>
      %209 = arith.mulf %208, %208 : vector<1x32xf32>
      %cst_87 = arith.constant dense<0.000000e+00> : vector<1xf32>
      %210 = vector.multi_reduction <add>, %209, %cst_87 [1] : vector<1x32xf32> to vector<1xf32>
      %211 = vector.shape_cast %210 : vector<1xf32> to vector<1x1xf32>
      %cst_88 = arith.constant 3.200000e+01 : f32
      %212 = vector.broadcast %cst_88 : f32 to vector<1x1xf32>
      %213 = arith.divf %211, %212 : vector<1x1xf32>
      %cst_89 = arith.constant 9.99999997E-7 : f32
      %214 = vector.broadcast %cst_89 : f32 to vector<1x1xf32>
      %215 = arith.addf %213, %214 : vector<1x1xf32>
      %216 = math.rsqrt %215 : vector<1x1xf32>
      %217 = vector.broadcast %216 : vector<1x1xf32> to vector<1x32xf32>
      %218 = arith.mulf %208, %217 : vector<1x32xf32>
      %219 = arith.mulf %218, %201 : vector<1x32xf32>
      %220 = arith.addf %219, %202 : vector<1x32xf32>
      %221 = arith.truncf %220 : vector<1x32xf32> to vector<1x32xbf16>
      %c0_90 = arith.constant 0 : index
      %c0_91 = arith.constant 0 : index
      %222 = vector.load %arg20[%c0_90, %c0_91] : memref<32x128xbf16, #tpu.memory_space<vmem>>, vector<32x128xbf16>
      %cst_92 = arith.constant dense<0.000000e+00> : vector<1x128xf32>
      %223 = tpu.matmul %221, %222, %cst_92 {dimension_numbers = #tpu.dot_dimension_numbers<[1], [0], [0], [1], [0, 0, 1, 1], [], []>} : vector<1x32xbf16>, vector<32x128xbf16>, vector<1x128xf32> -> vector<1x128xf32>
      %c0_93 = arith.constant 0 : index
      %c0_94 = arith.constant 0 : index
      %224 = vector.load %arg21[%c0_93, %c0_94] : memref<1x128xf32, #tpu.memory_space<vmem>>, vector<1x128xf32>
      %225 = arith.addf %223, %224 : vector<1x128xf32>
      %c0_95 = arith.constant 0 : index
      %c0_96 = arith.constant 0 : index
      %c0_97 = arith.constant 0 : index
      %226 = vector.load %arg22[%c0_95, %c0_96, %c0_97] : memref<1x1x128xf32, #tpu.memory_space<vmem>>, vector<1x1x128xf32>
      %227 = vector.shape_cast %226 : vector<1x1x128xf32> to vector<1x128xf32>
      %228 = vector.shape_cast %225 : vector<1x128xf32> to vector<1x1x128xf32>
      tpu.vector_store %arg22[%c0_95, %c0_96, %c0_97], %228 {strides = array<i32>} : memref<1x1x128xf32, #tpu.memory_space<vmem>>, vector<1x1x128xf32>,
    } else {
    }
    return
  }
  func.func @transform_0(%arg0: i32, %arg1: i32) -> (i32, i32, i32) {
    %c0_i32 = arith.constant 0 : i32
    %c0_i32_0 = arith.constant 0 : i32
    %c0_i32_1 = arith.constant 0 : i32
    return %arg0, %c0_i32, %c0_i32_0 : i32, i32, i32
  }
  func.func @transform_1(%arg0: i32, %arg1: i32) -> (i32, i32) {
    %c0_i32 = arith.constant 0 : i32
    %c0_i32_0 = arith.constant 0 : i32
    %c0_i32_1 = arith.constant 0 : i32
    return %c0_i32, %c0_i32_0 : i32, i32
  }
  func.func @transform_2(%arg0: i32, %arg1: i32) -> (i32, i32) {
    %c0_i32 = arith.constant 0 : i32
    %c0_i32_0 = arith.constant 0 : i32
    %c0_i32_1 = arith.constant 0 : i32
    return %c0_i32, %c0_i32_0 : i32, i32
  }
  func.func @transform_3(%arg0: i32, %arg1: i32) -> (i32, i32, i32) {
    %c0_i32 = arith.constant 0 : i32
    %c0_i32_0 = arith.constant 0 : i32
    %c0_i32_1 = arith.constant 0 : i32
    return %arg1, %c0_i32, %c0_i32_0 : i32, i32, i32
  }
  func.func @transform_4(%arg0: i32, %arg1: i32) -> (i32, i32, i32) {
    %c0_i32 = arith.constant 0 : i32
    %c0_i32_0 = arith.constant 0 : i32
    %c0_i32_1 = arith.constant 0 : i32
    return %arg1, %c0_i32, %c0_i32_0 : i32, i32, i32
  }
  func.func @transform_5(%arg0: i32, %arg1: i32) -> (i32, i32, i32) {
    %c0_i32 = arith.constant 0 : i32
    %c0_i32_0 = arith.constant 0 : i32
    %c0_i32_1 = arith.constant 0 : i32
    return %arg1, %c0_i32, %c0_i32_0 : i32, i32, i32
  }
  func.func @transform_6(%arg0: i32, %arg1: i32) -> (i32, i32, i32) {
    %c0_i32 = arith.constant 0 : i32
    %c0_i32_0 = arith.constant 0 : i32
    %c0_i32_1 = arith.constant 0 : i32
    return %arg1, %c0_i32, %c0_i32_0 : i32, i32, i32
  }
  func.func @transform_7(%arg0: i32, %arg1: i32) -> (i32, i32, i32) {
    %c0_i32 = arith.constant 0 : i32
    %c0_i32_0 = arith.constant 0 : i32
    %c0_i32_1 = arith.constant 0 : i32
    return %arg1, %c0_i32, %c0_i32_0 : i32, i32, i32
  }
  func.func @transform_8(%arg0: i32, %arg1: i32) -> (i32, i32, i32) {
    %c0_i32 = arith.constant 0 : i32
    %c0_i32_0 = arith.constant 0 : i32
    %c0_i32_1 = arith.constant 0 : i32
    return %arg1, %c0_i32, %c0_i32_0 : i32, i32, i32
  }
  func.func @transform_9(%arg0: i32, %arg1: i32) -> (i32, i32, i32) {
    %c0_i32 = arith.constant 0 : i32
    %c0_i32_0 = arith.constant 0 : i32
    %c0_i32_1 = arith.constant 0 : i32
    return %arg1, %c0_i32, %c0_i32_0 : i32, i32, i32
  }
  func.func @transform_10(%arg0: i32, %arg1: i32) -> (i32, i32, i32) {
    %c0_i32 = arith.constant 0 : i32
    %c0_i32_0 = arith.constant 0 : i32
    %c0_i32_1 = arith.constant 0 : i32
    return %arg1, %c0_i32, %c0_i32_0 : i32, i32, i32
  }
  func.func @transform_11(%arg0: i32, %arg1: i32) -> (i32, i32, i32) {
    %c0_i32 = arith.constant 0 : i32
    %c0_i32_0 = arith.constant 0 : i32
    %c0_i32_1 = arith.constant 0 : i32
    return %arg1, %c0_i32, %c0_i32_0 : i32, i32, i32
  }
  func.func @transform_12(%arg0: i32, %arg1: i32) -> (i32, i32, i32) {
    %c0_i32 = arith.constant 0 : i32
    %c0_i32_0 = arith.constant 0 : i32
    %c0_i32_1 = arith.constant 0 : i32
    return %arg1, %c0_i32, %c0_i32_0 : i32, i32, i32
  }
  func.func @transform_13(%arg0: i32, %arg1: i32) -> (i32, i32, i32) {
    %c0_i32 = arith.constant 0 : i32
    %c0_i32_0 = arith.constant 0 : i32
    %c0_i32_1 = arith.constant 0 : i32
    return %arg1, %c0_i32, %c0_i32_0 : i32, i32, i32
  }
  func.func @transform_14(%arg0: i32, %arg1: i32) -> (i32, i32, i32) {
    %c0_i32 = arith.constant 0 : i32
    %c0_i32_0 = arith.constant 0 : i32
    %c0_i32_1 = arith.constant 0 : i32
    return %arg1, %c0_i32, %c0_i32_0 : i32, i32, i32
  }
  func.func @transform_15(%arg0: i32, %arg1: i32) -> (i32, i32) {
    %c0_i32 = arith.constant 0 : i32
    %c0_i32_0 = arith.constant 0 : i32
    %c0_i32_1 = arith.constant 0 : i32
    return %c0_i32, %c0_i32_0 : i32, i32
  }
  func.func @transform_16(%arg0: i32, %arg1: i32) -> (i32, i32) {
    %c0_i32 = arith.constant 0 : i32
    %c0_i32_0 = arith.constant 0 : i32
    %c0_i32_1 = arith.constant 0 : i32
    return %c0_i32, %c0_i32_0 : i32, i32
  }
  func.func @transform_17(%arg0: i32, %arg1: i32) -> (i32, i32) {
    %c0_i32 = arith.constant 0 : i32
    %c0_i32_0 = arith.constant 0 : i32
    %c0_i32_1 = arith.constant 0 : i32
    return %c0_i32, %c0_i32_0 : i32, i32
  }
  func.func @transform_18(%arg0: i32, %arg1: i32) -> (i32, i32) {
    %c0_i32 = arith.constant 0 : i32
    %c0_i32_0 = arith.constant 0 : i32
    %c0_i32_1 = arith.constant 0 : i32
    return %c0_i32, %c0_i32_0 : i32, i32
  }
  func.func @transform_19(%arg0: i32, %arg1: i32) -> (i32, i32) {
    %c0_i32 = arith.constant 0 : i32
    %c0_i32_0 = arith.constant 0 : i32
    %c0_i32_1 = arith.constant 0 : i32
    return %c0_i32, %c0_i32_0 : i32, i32
  }
  func.func @transform_20(%arg0: i32, %arg1: i32) -> (i32, i32, i32) {
    %c0_i32 = arith.constant 0 : i32
    %c0_i32_0 = arith.constant 0 : i32
    %c0_i32_1 = arith.constant 0 : i32
    return %arg0, %c0_i32, %c0_i32_0 : i32, i32, i32
  }
  func.func @transform_21(%arg0: i32, %arg1: i32) -> (i32, i32, i32) {
    %c0_i32 = arith.constant 0 : i32
    %c0_i32_0 = arith.constant 0 : i32
    %c0_i32_1 = arith.constant 0 : i32
    return %arg0, %c0_i32, %c0_i32_0 : i32, i32, i32
  }
}

</mosaic_0001>

<bundles_post_ra>
// kernel: _lambda_.1
= control target key start
LH: loop header
LB: loop body
LE: loop exit
PB: predicated region body
PF: predicated region fallthrough
CT: control target
= control target key end

     0   :  { %s3480_s0 = inlined_call_operand.vmem [shape: f32[2,24,48], index: 0, kind: input, shape index: {}]   ;;  %s3481_s1 = inlined_call_operand.vmem [shape: bf16[48,32], index: 1, kind: input, shape index: {}]   ;;  %s3482_s2 = inlined_call_operand.vmem [shape: f32[24,32], index: 2, kind: input, shape index: {}]   ;;  %s3483_s3 = inlined_call_operand.vmem [shape: f32[2,1,32], index: 3, kind: input, shape index: {}]   ;;  %s3484_s4 = inlined_call_operand.vmem [shape: f32[2,1,32], index: 4, kind: input, shape index: {}]   ;;  %s3485_s5 = inlined_call_operand.vmem [shape: bf16[2,32,96], index: 5, kind: input, shape index: {}]   ;;  %s3486_s6 = inlined_call_operand.vmem [shape: f32[2,1,96], index: 6, kind: input, shape index: {}]   ;;  %s3487_s7 = inlined_call_operand.vmem [shape: bf16[2,32,32], index: 7, kind: input, shape index: {}]   ;;  %s3488_s8 = inlined_call_operand.vmem [shape: f32[2,1,32], index: 8, kind: input, shape index: {}]   ;;  %s3489_s9 = inlined_call_operand.vmem [shape: f32[2,1,32], index: 9, kind: input, shape index: {}]   ;;  %s3490_s10 = inlined_call_operand.vmem [shape: f32[2,1,32], index: 10, kind: input, shape index: {}]   ;;  %s3491_s11 = inlined_call_operand.vmem [shape: bf16[2,32,128], index: 11, kind: input, shape index: {}]   ;;  %s3492_s12 = inlined_call_operand.vmem [shape: f32[2,1,128], index: 12, kind: input, shape index: {}]   ;;  %s3493_s13 = inlined_call_operand.vmem [shape: bf16[2,128,32], index: 13, kind: input, shape index: {}]   ;;  %s3494_s14 = inlined_call_operand.vmem [shape: f32[2,1,32], index: 14, kind: input, shape index: {}]   ;;  %s3495_s15 = inlined_call_operand.vmem [shape: f32[1,32], index: 15, kind: input, shape index: {}]   ;;  %s3496_s16 = inlined_call_operand.vmem [shape: f32[1,32], index: 16, kind: input, shape index: {}]   ;;  %s3497_s17 = inlined_call_operand.vmem [shape: bf16[32,128], index: 17, kind: input, shape index: {}]   ;;  %s3498_s18 = inlined_call_operand.vmem [shape: bf16[32,128], index: 18, kind: input, shape index: {}]   ;;  %s3499_s19 = inlined_call_operand.vmem [shape: f32[1,128], index: 19, kind: input, shape index: {}]   ;;  %s3500_s20 = inlined_call_operand.hbm [shape: f32[2,1,128], index: 20, kind: output, shape index: {0}]   ;;  %s3501_s21 = inlined_call_operand.vmem [shape: f32[2,24,128], index: 21, kind: output, shape index: {1}]  }
   0x1   :  { %3519 = sst [smem:[#allocation18_spill]] %s3480_s0 }
   0x2   :  { %3520 = sst [smem:[#allocation19_spill]] %s3481_s1 }
   0x3   :  { %3521 = sst [smem:[#allocation20_spill]] %s3482_s2 }
   0x4   :  { %3522 = sst [smem:[#allocation21_spill]] %s3483_s3 }
   0x5   :  { %3523 = sst [smem:[#allocation22_spill]] %s3484_s4 }
   0x6   :  { %3524 = sst [smem:[#allocation23_spill]] %s3485_s5 }
   0x7   :  { %3525 = sst [smem:[#allocation24_spill]] %s3487_s7 }
   0x8   :  { %3526 = sst [smem:[#allocation25_spill]] %s3495_s15 }
   0x9   :  { %3527 = sst [smem:[#allocation26_spill]] %s3496_s16 }
   0xa   :  { %3528 = sst [smem:[#allocation27_spill]] %s3497_s17 }
   0xb   :  { %3529 = sst [smem:[#allocation28_spill]] %s3498_s18 }
   0xc   :  { %3530 = sst [smem:[#allocation29_spill]] %s3499_s19 }
   0xd   :  { %3531 = sst [smem:[#allocation30_spill]] %s3500_s20 }
   0xe   :  { %3532 = sst [smem:[#allocation31_spill]] %s3501_s21 }
   0xf   :  { %27 = vsyncpa [#allocation4], 0 }
  0x10   :  { %29 = vsyncpa [#allocation4 + $0x1], 0  ;;  %s2930_s2 = smov 0   ;;  %s2932_s25 = smov 0  }
  0x11   :  { %s2934_s26 = smov 0   ;;  %s2936_s27 = smov 0  }
  0x12   :  { %s2938_s3 = smov 0   ;;  %s2940_s28 = smov 0  }
  0x13   :  { %s2942_s29 = smov 0   ;;  %s2944_s0 = smov 0  }
  0x14 LB: > { %3533 = sst [smem:[#allocation6_spill]] %s2780_s2  ;;  %s2355_s4 = sadd.s32 4294967295, %s2808_s0   ;;  %s2808_s0 = sphi %s2944_s0, %s35_s0   ;;  %s2804_s29 = sphi %s2942_s29, %s3586_s29   ;;  %s2800_s28 = sphi %s2940_s28, %s3585_s28   ;;  %s2796_s3 = sphi %s2938_s3, %s3584_s3   ;;  %s2792_s27 = sphi %s2936_s27, %s3589_s27   ;;  %s2788_s26 = sphi %s2934_s26, %s3582_s26   ;;  %s2784_s25 = sphi %s2932_s25, %s3588_s25   ;;  %s2780_s2 = sphi %s2930_s2, %s3587_s2  }
  0x15   : > { %3534 = sst [smem:[#allocation7_spill]] %s2788_s26  ;;  %s2356_s30 = sadd.s32 4294967294, %s2808_s0  }
  0x16   : > { %3535 = sst [smem:[#allocation8_spill]] %s2792_s27  ;;  %s44_s5 = sadd.s32 1, %s2800_s28 }
  0x17   : > { %3536 = sst [smem:[#allocation9_spill]] %s2796_s3  ;;  %p45_p0 = scmp.ge.s32.totalorder %s44_s5, 2 }
  0x18   : > { %3537 = sst [smem:[#allocation10_spill]] %s2800_s28  ;;  %s47_s22 = sadd.s32 1, %s2804_s29 }
  0x19   : > { %3538 = sst [smem:[#allocation11_spill]] %s2804_s29  ;;  %p549_p1 = scmp.ne.s32.totalorder %s2788_s26, %s2784_s25 }
  0x1a   : > { %3539 = sst [smem:[#allocation12_spill]] %s2808_s0  ;;  %p550_p2 = scmp.eq.s32.totalorder %s2355_s4, 3 }
  0x1b   : > { %s3591_s5 = smov (%p45_p0, %s44_s5), 0  ;;  %s3593_s22 = smov (!%p45_p0, %s47_s22), %s2804_s29 }
  0x1c   : > { %3540 = sst [smem:[#allocation13_spill]] %s3591_s5  ;;  %p2979_p3 = por %p550_p2, %p549_p1 }
  0x1d   : > { %p555_p4 = scmp.ne.s32.totalorder %s2784_s25, %s2780_s2  ;;  %p49_p5 = scmp.ge.s32.totalorder %s3593_s22, 2 }
  0x1e   : > { %s3541_s23 = scalar_select %p2979_p3, 1, 0 }
  0x1f   : > { %p556_p6 = scmp.eq.s32.totalorder %s2356_s30, 3  ;;  %p2359_p7 = scmp.ge.s32.totalorder %s2808_s0, 1 }
  0x20   : > { %3542 = sst [smem:[#allocation14_spill]] %s3541_s23  ;;  %p709_p8 = scmp.lt.s32.totalorder %s2808_s0, 5 }
  0x21   : > { %s3595_s22 = smov (%p49_p5, %s3593_s22), 0  ;;  %p2989_p9 = por %p556_p6, %p555_p4 }
  0x22   : > { %3543 = sst [smem:[#allocation15_spill]] %s3595_s22  ;;  %p710_p10 = pnand %p2359_p7, %p709_p8 }
  0x23   : > { %s3544_s1 = scalar_select %p2989_p9, 1, 0 }
  0x24   : > { %s536_s24 = ssub.s32 %s2804_s29, %s3595_s22  ;;  %s539_s4 = sadd.s32 1, %s2788_s26 }
  0x25   : > { %3545 = sst [smem:[#allocation16_spill]] %s3544_s1  ;;  %p537_p11 = scmp.eq.s32.totalorder %s536_s24, 0 }
  0x26   : > { %713 = sbr.rel (%p710_p10) target bundleno = 2763 (0xacb), region = 100  ;;  %p817_p12 = scmp.lt.s32.totalorder (!%p710_p10), %s2796_s3, 1 }
  0x27   : > { %s2997_s5 = scalar_select %p537_p11, %s2788_s26, %s539_s4  }
  0x28   : > { %p822_p13 = scmp.lt.s32.totalorder (!%p710_p10), %s2792_s27, 1  ;;  %s3550_s17 = sld [smem:[#allocation23_spill]] (!%p710_p10) }
  0x29   : > { %3546 = sst [smem:[#allocation17_spill]] %s2997_s5 }
  0x2a   : > { %s3551_s7 = sld [smem:[#allocation24_spill]] (!%p710_p10) }
  0x2b   : > { %s818_s28 = scalar_select %p817_p12, %s2796_s3, 1 }
  0x2c   : > { %s3004_s2 = scalar_select %p822_p13, %s2792_s27, 1 }
  0x2d   : > { %s2515_s24 = smul.u32 24, %s818_s28  ;;  %s3549_s3 = sld [smem:[#allocation18_spill]] }
  0x2e   : > { %s2485_s16 = sshll.u32 %s3004_s2, 4  ;;  %s865_s20 = scalar_lea.vmem %s3494_s14, %s3004_s2 }
  0x2f   : > { %s3021_s27 = scalar_lea.vmem %s3550_s17, %s2485_s16  ;;  %s3047_s28 = scalar_lea.vmem %s3491_s11, %s2485_s16 }
  0x30   : > { %s3030_s26 = scalar_lea.vmem %s3551_s7, %s2485_s16  ;;  %s2488_s7 = sshll.u32 %s3004_s2, 6 }
  0x31   : > { %s3061_s0 = scalar_lea.vmem %s3493_s13, %s2488_s7  ;;  %s3552_s18 = sld [smem:[#allocation31_spill]] }
  0x32   : > { %s3553_s16 = sand.u32 1, %s2784_s25   ;;  %s3554_s29 = sld [smem:[#allocation8_spill]] }
  0x33   : > { %s821_s19 = scalar_lea.vmem %s3549_s3, %s2515_s24  ;;  %s3070_s21 = scalar_lea.vmem [#allocation3], %s3553_s16 }
  0x37   : > { %s3066_s30 = scalar_lea.vmem %s3552_s18, %s2515_s24 }
  0x38   : > { %p2370_p0 = scmp.ne.s32.totalorder %s3554_s29, 0 }
  0x39   : > { %s3555_s5 = sld [smem:[#allocation19_spill]] (!%p2370_p0) }
  0x3a   : > { %875 = sbr.rel (%p2370_p0) target bundleno = 212 (0xd4), region = 104  ;;  %s3556_s18 = sld [smem:[#allocation20_spill]] (!%p2370_p0) }
  0x3f   : > { %v2491_v0 = vld [vmem:[%s3555_s5 + $0x10] sm:$0xff]  ;;  %v2490_v1 = vld [vmem:[%s3555_s5 + $0x8] sm:$0xff]  ;;  %v2489_v2 = vld [vmem:[%s3555_s5] sm:$0xff]  ;;  %vm908_vm0 = vcmask 392192   ;;  %vm933_vm1 = vcmask 261120  }
  0x40   : > { %920 = vmatpush.bf16.msra.mxu0 %v2491_v0  ;;  %2510 = vmatpush.bf16.msra.mxu1 %v2491_v0  ;;  %v876_v3 = vld [vmem:[%s821_s19] sm:$0xff]  ;;  %v877_v4 = vld [vmem:[%s821_s19 + $0x8] sm:$0xff]  ;;  %v878_v5 = vld [vmem:[%s821_s19 + $0x10] sm:$0xff] }
  0x41   : > { %v879_v6 = vpack.c.bf16 %v877_v4, %v876_v3  ;;  %v880_v7 = vpack.c.bf16 %v878_v5, %v878_v5  ;;  %v887_v8 = vld [vmem:[%s3556_s18] sm:$0xff]  ;;  %v889_v9 = vld [vmem:[%s3556_s18 + $0x10] sm:$0xff]  ;;  %v888_v14 = vld [vmem:[%s3556_s18 + $0x8] sm:$0xff] }
  0x44   : > { %921 = vmatpush.bf16.msra.mxu0 %v2490_v1  ;;  %2511 = vmatpush.bf16.msra.mxu1 %v2490_v1 }
  0x48   : > { %922 = vmatpush.bf16.msra.mxu0 %v2489_v2  ;;  %2512 = vmatpush.bf16.msra.mxu1 %v2489_v2 }
  0x4b   : > { %2383 = vmatmul.msk.bf16.vlgmr.msra.gmra.mxu0 %vm908_vm0, %v879_v6  ;;  %2384 = vmatmul.msk.bf16.vlgmr.msra.gmra.mxu1 %vm908_vm0, %v880_v7 }
  0xc8   : > { %v924_v10 = vpop.f32.mrf.mxu0  ;;  %v929_v11 = vpop.f32.mrf.mxu1 }
  0xc9   : > { %v925_v12 = vadd.f32 %v924_v10, %v887_v8  ;;  %v930_v13 = vadd.f32 %v929_v11, %v889_v9 }
  0xcb   : > { %934 = vst.msk [vmem:[#allocation2] sm:$0xff] %vm933_vm1, %v925_v12 }
  0xcc   : > { %936 = vst.msk [vmem:[#allocation2 + $0x10] sm:$0xff] %vm933_vm1, %v930_v13 }
  0xd0   : > { %v926_v15 = vpop.f32.mrf.mxu0  ;;  %v931_v16 = vpop.f32.mrf.mxu1 }
  0xd1   : > { %v927_v17 = vadd.f32 %v926_v15, %v888_v14 }
  0xd3   : > { %935 = vst.msk [vmem:[#allocation2 + $0x8] sm:$0xff] %vm933_vm1, %v927_v17 }
  0xd4 PF: > { %v937_v18 = vld [vmem:[#allocation2] sm:$0xff]  ;;  %vm942_vm2 = vcmask 261120   ;;  %v939_v19 = vld [vmem:[#allocation2 + $0x10] sm:$0xff]  ;;  %v2810_v24 = vmov 32.0   ;;  %v2493_v46 = vld [vmem:[%s3021_s27 + $0x8] sm:$0xff]  ;;  %s3557_s4 = sld [smem:[#allocation21_spill]]  ;;  %s3561_s17 = scalar_lea.vmem %s3486_s6, %s3004_s2 }
  0xd5   : > { %v943_v20 = vsel %vm942_vm2, %v937_v18, 0.0  ;;  %v949_v21 = vsel %vm942_vm2, %v939_v19, 0.0  ;;  %2635 = vrcp.f32 %v2810_v24  ;;  %1062 = vmatpush.bf16.msra.mxu0 %v2493_v46  ;;  %v2492_v49 = vld [vmem:[%s3021_s27] sm:$0xff]  ;;  %s3559_s23 = sld [smem:[#allocation22_spill]]  ;;  %s2811_s19 = smov 120   ;;  %vm1128_vm13 = vcmask 64512  }
  0xd6   : > { %944 = vadd.xlane.f32.xlu0 %v943_v20  ;;  %950 = vadd.xlane.f32.xlu1 %v949_v21  ;;  %s2812_s16 = smov 104   ;;  %s2813_s27 = smov 112   ;;  %vm1477_vm14 = vcmask 1043456   ;;  %vm1313_vm0 = vcmask 195584   ;;  %vm1658_vm1 = vcmask 130048  }
  0xd7   : > { %s2814_s29 = smov 96   ;;  %s2818_s7 = smov 8  }
  0xd8   : > { %s2819_s3 = smov 16   ;;  %s3563_s15 = scalar_lea.vmem %s3489_s9, %s3004_s2 }
  0xd9   : > { %1063 = vmatpush.bf16.msra.mxu0 %v2492_v49 }
  0xda   : > { %v938_v22 = vld [vmem:[#allocation2 + $0x8] sm:$0xff]  ;;  %s3558_s1 = scalar_lea.vmem %s3557_s4, %s3004_s2  ;;  %s2815_s4 = smov 64  }
  0xdb   : > { %v946_v23 = vsel %vm942_vm2, %v938_v22, 0.0  ;;  %v2636_v25 = vpop.eup %2635  ;;  %v2627_v7 = vld [vmem:[%s3558_s1] ss:$0 sm:$0xff]  ;;  %s3560_s24 = scalar_lea.vmem %s3559_s23, %s3004_s2  ;;  %s2817_s1 = smov 24  }
  0xdc   : > { %v953_v26 = vmul.f32 32.0, %v2636_v25  ;;  %vm957_vm3 = vweird.f32 %v2636_v25  ;;  %v2628_v14 = vld [vmem:[%s3560_s24] ss:$0 sm:$0xff]  ;;  %s3562_s24 = scalar_lea.vmem %s3488_s8, %s3004_s2 }
  0xde   : > { %947 = vadd.xlane.f32.xlu0 %v946_v23  ;;  %v954_v27 = vsub.f32 1.0, %v953_v26 }
  0xe0   : > { %v955_v28 = vmul.f32 %v2636_v25, %v954_v27 }
  0xe2   : > { %v956_v29 = vadd.f32 %v2636_v25, %v955_v28  ;;  %v2629_v28 = vld [vmem:[%s3561_s17] ss:$0 sm:$0xff] }
  0xe4   : > { %v3094_v30 = vsel %vm957_vm3, %v2636_v25, %v956_v29 }
 0x149   : > { %v945_v31 = vpop.xlane.xlu0 %944  ;;  %v951_v35 = vpop.xlane.xlu1 %950 }
 0x14a   : > { %v959_v32 = vmul.f32 %v3094_v30, %v945_v31  ;;  %v961_v39 = vmul.f32 %v3094_v30, %v951_v35 }
 0x14c   : > { %v962_v33 = vsub.f32 %v937_v18, %v959_v32  ;;  %v3100_v41 = vsub.f32 %v939_v19, %v961_v39 }
 0x14e   : > { %v965_v34 = vmul.f32 %v962_v33, %v962_v33  ;;  %v967_v44 = vmul.f32 %v3100_v41, %v3100_v41 }
 0x150   : > { %v968_v36 = vsel %vm942_vm2, %v965_v34, 0.0  ;;  %v974_v45 = vsel %vm942_vm2, %v967_v44, 0.0 }
 0x151   : > { %969 = vadd.xlane.f32.xlu1 %v968_v36  ;;  %v948_v37 = vpop.xlane.xlu0 %947 }
 0x152   : > { %v960_v38 = vmul.f32 %v3094_v30, %v948_v37 }
 0x154   : > { %v963_v40 = vsub.f32 %v938_v22, %v960_v38 }
 0x156   : > { %v966_v42 = vmul.f32 %v963_v40, %v963_v40 }
 0x158   : > { %v971_v43 = vsel %vm942_vm2, %v966_v42, 0.0 }
 0x159   : > { %972 = vadd.xlane.f32.xlu2 %v971_v43 }
 0x161   : > { %975 = vadd.xlane.f32.xlu2 %v974_v45 }
 0x1c4   : > { %v970_v47 = vpop.xlane.xlu1 %969 }
 0x1c5   : > { %v977_v48 = vmul.f32 %v970_v47, %v3094_v30 }
 0x1c7   : > { %v980_v50 = vadd.f32 1e-06, %v977_v48 }
 0x1c9   : > { %2637 = vrsqrt.f32 %v980_v50  ;;  %vm989_vm5 = vweird.f32 %v980_v50 }
 0x1cc   : > { %v973_v51 = vpop.xlane.xlu2 %972 }
 0x1cd   : > { %v978_v52 = vmul.f32 %v973_v51, %v3094_v30 }
 0x1cf   : > { %v2638_v53 = vpop.eup %2637  ;;  %v981_v54 = vadd.f32 1e-06, %v978_v52 }
 0x1d0   : > { %v984_v55 = vmul.f32 %v2638_v53, %v980_v50  ;;  %vm990_vm4 = vweird.f32 %v2638_v53 }
 0x1d1   : > { %2639 = vrsqrt.f32 %v981_v54  ;;  %vm991_vm6 = vmor %vm989_vm5, %vm990_vm4  ;;  %vm999_vm8 = vweird.f32 %v981_v54 }
 0x1d2   : > { %v985_v56 = vmul.f32 %v2638_v53, %v984_v55 }
 0x1d4   : > { %v986_v57 = vmul.f32 0.5, %v985_v56  ;;  %v976_v58 = vpop.xlane.xlu2 %975 }
 0x1d5   : > { %v979_v59 = vmul.f32 %v976_v58, %v3094_v30 }
 0x1d6   : > { %v987_v60 = vsub.f32 1.5, %v986_v57 }
 0x1d7   : > { %v2640_v61 = vpop.eup %2639  ;;  %v982_v62 = vadd.f32 1e-06, %v979_v59 }
 0x1d8   : > { %v988_v63 = vmul.f32 %v2638_v53, %v987_v60  ;;  %v994_v0 = vmul.f32 %v2640_v61, %v981_v54  ;;  %vm1000_vm7 = vweird.f32 %v2640_v61 }
 0x1d9   : > { %2641 = vrsqrt.f32 %v982_v62  ;;  %vm1001_vm9 = vmor %vm999_vm8, %vm1000_vm7  ;;  %vm1009_vm10 = vweird.f32 %v982_v62 }
 0x1da   : > { %v995_v1 = vmul.f32 %v2640_v61, %v994_v0  ;;  %v992_v2 = vsel %vm991_vm6, %v2638_v53, %v988_v63 }
 0x1db   : > { %v1013_v6 = vmul.f32 %v992_v2, %v962_v33 }
 0x1dc   : > { %v996_v3 = vmul.f32 0.5, %v995_v1 }
 0x1dd   : > { %v1019_v13 = vmul.f32 %v2627_v7, %v1013_v6 }
 0x1de   : > { %v997_v4 = vsub.f32 1.5, %v996_v3 }
 0x1df   : > { %v2642_v5 = vpop.eup %2641  ;;  %v1025_v18 = vadd.f32 %v2628_v14, %v1019_v13 }
 0x1e0   : > { %v998_v8 = vmul.f32 %v2640_v61, %v997_v4  ;;  %v1004_v9 = vmul.f32 %v2642_v5, %v982_v62  ;;  %vm1010_vm11 = vweird.f32 %v2642_v5 }
 0x1e1   : > { %vm1011_vm12 = vmor %vm1009_vm10, %vm1010_vm11 }
 0x1e2   : > { %v1002_v10 = vsel %vm1001_vm9, %v2640_v61, %v998_v8  ;;  %v1005_v11 = vmul.f32 %v2642_v5, %v1004_v9 }
 0x1e3   : > { %v1014_v12 = vmul.f32 %v1002_v10, %v963_v40 }
 0x1e4   : > { %v1006_v15 = vmul.f32 0.5, %v1005_v11 }
 0x1e5   : > { %v1020_v16 = vmul.f32 %v2627_v7, %v1014_v12 }
 0x1e6   : > { %v1007_v17 = vsub.f32 1.5, %v1006_v15 }
 0x1e7   : > { %v1026_v19 = vadd.f32 %v2628_v14, %v1020_v16 }
 0x1e8   : > { %v1008_v20 = vmul.f32 %v2642_v5, %v1007_v17 }
 0x1e9   : > { %v1028_v21 = vpack.c.bf16 %v1026_v19, %v1025_v18 }
 0x1ea   : > { %v1012_v22 = vsel %vm1011_vm12, %v2642_v5, %v1008_v20 }
 0x1eb   : > { %2393 = vmatmul.msk.bf16.vlgmr.msra.gmra.mxu0 %vm942_vm2, %v1028_v21  ;;  %v1015_v23 = vmul.f32 %v1012_v22, %v3100_v41 }
 0x1ed   : > { %v1021_v24 = vmul.f32 %v2627_v7, %v1015_v23 }
 0x1ef   : > { %v1027_v25 = vadd.f32 %v2628_v14, %v1021_v24 }
 0x1f1   : > { %v1029_v26 = vpack.c.bf16 %v1027_v25, %v1027_v25 }
 0x1fb   : > { %2394 = vmatmul.msk.bf16.gmra.mxu0 %vm942_vm2, %v1029_v26 }
 0x268   : > { %v1065_v27 = vpop.f32.mrf.mxu0 }
 0x269   : > { %v1066_v29 = vadd.f32 %v2629_v28, %v1065_v27 }
 0x26b   : > { %v1104_v33 = vpack.c.bf16 %v1066_v29, %v1066_v29 }
 0x26d   : > { %v1119_v35 = vunpack.c.l.b16 %v1104_v33 }
 0x270   : > { %v1067_v31 = vpop.f32.mrf.mxu0 }
 0x271   : > { %v1068_v32 = vadd.f32 %v2629_v28, %v1067_v31 }
 0x273   : > { %1079 = vrot.lane.b32.xlu2 %v1068_v32, %s2811_s19  ;;  %v1105_v34 = vpack.c.bf16 %v1068_v32, %v1068_v32  ;;  %v2607_v42 = vpack.i.bf16 %v1068_v32, %v1066_v29 }
 0x275   : > { %v1120_v36 = vunpack.c.l.b16 %v1105_v34 }
 0x277   : > { %v3129_v37 = vpack.c.b16 %v1120_v36, %v1119_v35 }
 0x278   : > { %v1070_v38 = vpop.f32.mrf.mxu0 }
 0x279   : > { %v1071_v39 = vadd.f32 %v2629_v28, %v1070_v38 }
 0x27b   : > { %1099 = vrot.lane.b32.xlu2 %v1071_v39, %s2812_s16  ;;  %1090 = vrot.lane.b32.xlu1 %v1071_v39, %s2813_s27  ;;  %v2597_v40 = vpack.i.bf16 %v1066_v29, %v1071_v39  ;;  %v1106_v15 = vpack.c.bf16 %v1071_v39, %v1071_v39 }
 0x27d   : > { %2598 = vrot.lane.b32.xlu0 %v2597_v40, %s2811_s19  ;;  %v1121_v16 = vunpack.c.l.b16 %v1106_v15 }
 0x27f   : > { %v3154_v17 = vpack.c.b16 %v1121_v16, %v1121_v16 }
 0x280   : > { %v1072_v41 = vpop.f32.mrf.mxu0 }
 0x281   : > { %v1297_v41 = vlaneseq }
 0x283   : > { %2608 = vrot.lane.b32.xlu1 %v2607_v42, %s2812_s16  ;;  %s3564_s16 = scalar_lea.vmem %s3490_s10, %s3004_s2 }
 0x285   : > { %2603 = vrot.lane.b32.xlu0 %v2607_v42, %s2813_s27  ;;  %v1298_v42 = vand.u32 127, %v1297_v41 }
 0x287   : > { %vm1299_vm15 = vcmp.lt.s32.totalorder %v1298_v42, 17 }
 0x2cd   : > { %v1080_v43 = vpop.permute.xlu2 %1079 }
 0x2ce   : > { %v1108_v48 = vpack.c.bf16 %v1080_v43, %v1080_v43 }
 0x2d0   : > { %v1163_v56 = vunpack.c.l.b16 %v1108_v48 }
 0x2d5   : > { %v1100_v45 = vpop.permute.xlu2 %1099 }
 0x2d6   : > { %v1115_v52 = vpack.c.bf16 %v1100_v45, %v1100_v45 }
 0x2d8   : > { %v1248_v59 = vunpack.c.l.b16 %v1115_v52 }
 0x2da   : > { %v3140_v6 = vpack.c.b16 %v1248_v59, %v1248_v59 }
 0x2ed   : > { %v1091_v44 = vpop.permute.xlu1 %1090 }
 0x2ee   : > { %v1112_v46 = vpack.c.bf16 %v1091_v44, %v1091_v44  ;;  %v2816_v44 = vmov -1e+30  }
 0x2ef   : > { %v2599_v47 = vpop.permute.xlu0 %2598  ;;  %v1300_v45 = vsel %vm1299_vm15, 0.0, %v2816_v44 }
 0x2f0   : > { %v1206_v49 = vunpack.c.l.b16 %v1112_v46  ;;  %v2601_v50 = vunpack.i.h.bf16 %v2599_v47  ;;  %v2600_v51 = vunpack.i.l.bf16 %v2599_v47 }
 0x2f2   : > { %v3131_v53 = vpack.c.b16 %v1206_v49, %v1206_v49  ;;  %v1107_v54 = vpack.c.bf16 %v2601_v50, %v2601_v50  ;;  %v1109_v55 = vpack.c.bf16 %v2600_v51, %v2600_v51 }
 0x2f4   : > { %v1162_v57 = vunpack.c.l.b16 %v1107_v54  ;;  %v1164_v58 = vunpack.c.l.b16 %v1109_v55  ;;  %1211 = vrot.lane.b32.xlu2 %v3131_v53, %s2814_s29 }
 0x2f5   : > { %v2609_v60 = vpop.permute.xlu1 %2608 }
 0x2f6   : > { %v3135_v61 = vpack.c.b16 %v1164_v58, %v1164_v58  ;;  %v2611_v62 = vunpack.i.h.bf16 %v2609_v60  ;;  %v2610_v63 = vunpack.i.l.bf16 %v2609_v60  ;;  %v1165_v0 = vpack.c.b16 %v1163_v56, %v1162_v57 }
 0x2f7   : > { %v2604_v1 = vpop.permute.xlu0 %2603 }
 0x2f8   : > { %v1114_v2 = vpack.c.bf16 %v2611_v62, %v2611_v62  ;;  %v1113_v3 = vpack.c.bf16 %v2610_v63, %v2610_v63  ;;  %v2606_v4 = vunpack.i.h.bf16 %v2604_v1  ;;  %v2605_v5 = vunpack.i.l.bf16 %v2604_v1  ;;  %1169 = vrot.lane.b32.xlu0 %v3135_v61, %s2814_s29  ;;  %1167 = vrot.lane.b32.xlu1 %v1165_v0, %s2814_s29 }
 0x2fa   : > { %v1247_v7 = vunpack.c.l.b16 %v1114_v2  ;;  %v1246_v8 = vunpack.c.l.b16 %v1113_v3  ;;  %v1111_v9 = vpack.c.bf16 %v2606_v4, %v2606_v4  ;;  %v1110_v10 = vpack.c.bf16 %v2605_v5, %v2605_v5 }
 0x2fc   : > { %v1205_v11 = vunpack.c.l.b16 %v1111_v9  ;;  %v1204_v12 = vunpack.c.l.b16 %v1110_v10  ;;  %1253 = vrot.lane.b32.xlu2 %v3140_v6, %s2814_s29  ;;  %v3146_v14 = vpack.c.b16 %v1247_v7, %v1246_v8 }
 0x2fe   : > { %v3144_v13 = vpack.c.b16 %v1205_v11, %v1204_v12 }
 0x300   : > { %1209 = vrot.lane.b32.xlu0 %v3144_v13, %s2814_s29  ;;  %1251 = vrot.lane.b32.xlu1 %v3146_v14, %s2814_s29 }
 0x304   : > { %1124 = vrot.lane.b32.xlu2 %v3129_v37, %s2814_s29 }
 0x308   : > { %1126 = vrot.lane.b32.xlu0 %v3154_v17, %s2814_s29  ;;  %1549 = vrot.lane.b32.xlu1 %v3131_v53, %s2815_s4 }
 0x30c   : > { %1509 = vrot.lane.b32.xlu2 %v3135_v61, %s2815_s4 }
 0x310   : > { %1507 = vrot.lane.b32.xlu0 %v1165_v0, %s2815_s4 }
 0x34e   : > { %v1212_v18 = vpop.permute.xlu2 %1211 }
 0x34f   : > { %v1223_v19 = vsel %vm1128_vm13, %v1212_v18, 0 }
 0x350   : > { %1231 = vmatpush.bf16.xpose.msra.mxu3 %v1223_v19 }
 0x356   : > { %v1254_v20 = vpop.permute.xlu2 %1253 }
 0x357   : > { %v1265_v21 = vsel %vm1128_vm13, %v1254_v20, 0 }
 0x358   : > { %1273 = vmatpush.bf16.xpose.msrb.mxu0 %v1265_v21 }
 0x35e   : > { %v1125_v22 = vpop.permute.xlu2 %1124 }
 0x35f   : > { %v1136_v40 = vsel %vm1128_vm13, %v1125_v22, 0 }
 0x366   : > { %v1510_v26 = vpop.permute.xlu2 %1509 }
 0x367   : > { %v1519_v33 = vsel %vm1477_vm14, %v1510_v26, 0 }
 0x36a   : > { %v1170_v23 = vpop.permute.xlu0 %1169  ;;  %v1168_v24 = vpop.permute.xlu1 %1167 }
 0x36b   : > { %v1181_v25 = vsel %vm1128_vm13, %v1170_v23, 0  ;;  %v1178_v29 = vsel %vm1128_vm13, %v1168_v24, 0 }
 0x36c   : > { %1189 = vmatpush.bf16.xpose.msra.mxu2 %v1181_v25 }
 0x372   : > { %v1210_v27 = vpop.permute.xlu0 %1209  ;;  %v1252_v28 = vpop.permute.xlu1 %1251 }
 0x373   : > { %v1220_v31 = vsel %vm1128_vm13, %v1210_v27, 0  ;;  %v1262_v32 = vsel %vm1128_vm13, %v1252_v28, 0 }
 0x374   : > { %1190 = vmatpush.bf16.xpose.msra.mxu2 %v1178_v29  ;;  %1232 = vmatpush.bf16.xpose.msra.mxu3 %v1220_v31 }
 0x375   : > { %1274 = vmatpush.bf16.xpose.msrb.mxu0 %v1262_v32 }
 0x37a   : > { %v1127_v34 = vpop.permute.xlu0 %1126  ;;  %v1550_v35 = vpop.permute.xlu1 %1549 }
 0x37b   : > { %2397 = vmatmul.msk.bf16.vlgmr.msra.gmra.mxu2 %vm1128_vm13, %v1165_v0  ;;  %2399 = vmatmul.msk.bf16.vlgmr.msra.gmra.mxu3 %vm1128_vm13, %v3144_v13  ;;  %v1139_v36 = vsel %vm1128_vm13, %v1127_v34, 0  ;;  %v1559_v38 = vsel %vm1477_vm14, %v1550_v35, 0 }
 0x37c   : > { %1527 = vmatpush.bf16.msrb.mxu2 %v1519_v33  ;;  %2401 = vmatmul.msk.bf16.vlgmr.msrb.gmra.mxu0 %vm1128_vm13, %v3146_v14 }
 0x37d   : > { %1147 = vmatpush.bf16.xpose.msra.mxu1 %v1139_v36  ;;  %1567 = vmatpush.bf16.msrb.mxu3 %v1559_v38 }
 0x382   : > { %v1508_v39 = vpop.permute.xlu0 %1507 }
 0x383   : > { %1528 = vmatpush.bf16.msrb.mxu2 %v1508_v39 }
 0x385   : > { %1148 = vmatpush.bf16.xpose.msra.mxu1 %v1136_v40 }
 0x38b   : > { %2398 = vmatmul.msk.bf16.gmra.mxu2 %vm1128_vm13, %v3135_v61  ;;  %2400 = vmatmul.msk.bf16.gmra.mxu3 %vm1128_vm13, %v3131_v53 }
 0x38c   : > { %2395 = vmatmul.msk.bf16.vlgmr.msra.gmra.mxu1 %vm1128_vm13, %v3129_v37  ;;  %2402 = vmatmul.msk.bf16.gmra.mxu0 %vm1128_vm13, %v3140_v6 }
 0x39c   : > { %2396 = vmatmul.msk.bf16.gmra.mxu1 %vm1128_vm13, %v3154_v17 }
 0x3f9   : > { %v1276_v43 = vpop.f32.mrf.mxu0 }
 0x3fa   : > { %v1294_v46 = vmul.f32 0.35355338, %v1276_v43 }
 0x3fc   : > { %v3188_v47 = vadd.f32 %v1300_v45, %v1294_v46 }
 0x3fe   : > { %v1192_v48 = vpop.f32.mrf.mxu2  ;;  %v1234_v49 = vpop.f32.mrf.mxu3  ;;  %v1341_v50 = vsel %vm1313_vm0, %v3188_v47, -inf }
 0x3ff   : > { %1342 = vmax.xlane.f32.xlu0 %v1341_v50  ;;  %v1291_v61 = vmul.f32 0.35355338, %v1234_v49  ;;  %v1288_v7 = vmul.f32 0.35355338, %v1192_v48 }
 0x401   : > { %v1278_v51 = vpop.f32.mrf.mxu0  ;;  %v1307_v4 = vadd.f32 %v1300_v45, %v1291_v61  ;;  %v1304_v19 = vadd.f32 %v1300_v45, %v1288_v7 }
 0x402   : > { %v1295_v8 = vmul.f32 0.35355338, %v1278_v51 }
 0x403   : > { %v1332_v9 = vsel %vm1313_vm0, %v1307_v4, -inf  ;;  %v1323_v23 = vsel %vm1313_vm0, %v1304_v19, -inf }
 0x404   : > { %v1311_v18 = vadd.f32 %v1300_v45, %v1295_v8 }
 0x406   : > { %v1194_v52 = vpop.f32.mrf.mxu2  ;;  %v1236_v53 = vpop.f32.mrf.mxu3  ;;  %v1344_v22 = vsel %vm1313_vm0, %v1311_v18, -inf }
 0x407   : > { %v1289_v54 = vmul.f32 0.35355338, %v1194_v52  ;;  %v1292_v21 = vmul.f32 0.35355338, %v1236_v53 }
 0x409   : > { %v1150_v55 = vpop.f32.mrf.mxu1  ;;  %v1281_v57 = vpop.f32.mrf.mxu0  ;;  %v1305_v58 = vadd.f32 %v1300_v45, %v1289_v54  ;;  %v1308_v25 = vadd.f32 %v1300_v45, %v1292_v21 }
 0x40a   : > { %v1285_v56 = vmul.f32 0.35355338, %v1150_v55  ;;  %v1296_v31 = vmul.f32 0.35355338, %v1281_v57 }
 0x40b   : > { %v1326_v59 = vsel %vm1313_vm0, %v1305_v58, -inf  ;;  %v1335_v27 = vsel %vm1313_vm0, %v1308_v25, -inf }
 0x40c   : > { %v3193_v60 = vadd.f32 %v1300_v45, %v1285_v56  ;;  %1327 = vmax.xlane.f32.xlu0 %v1326_v59  ;;  %v3215_v32 = vadd.f32 %v1300_v45, %v1296_v31 }
 0x40e   : > { %v1314_v62 = vsel %vm1313_vm0, %v3193_v60, -inf  ;;  %v1197_v63 = vpop.f32.mrf.mxu2  ;;  %v1239_v0 = vpop.f32.mrf.mxu3 }
 0x40f   : > { %1315 = vmax.xlane.f32.xlu2 %v1314_v62  ;;  %v1290_v26 = vmul.f32 0.35355338, %v1197_v63  ;;  %v1293_v33 = vmul.f32 0.35355338, %v1239_v0 }
 0x411   : > { %v1152_v1 = vpop.f32.mrf.mxu1  ;;  %v1283_v3 = vpop.f32.mrf.mxu0  ;;  %v3209_v28 = vadd.f32 %v1300_v45, %v1290_v26  ;;  %v3219_v34 = vadd.f32 %v1300_v45, %v1293_v33 }
 0x412   : > { %v1286_v2 = vmul.f32 0.35355338, %v1152_v1 }
 0x413   : > { %v1329_v29 = vsel %vm1313_vm0, %v3209_v28, -inf  ;;  %v1338_v35 = vsel %vm1313_vm0, %v3219_v34, -inf }
 0x414   : > { %v3197_v5 = vadd.f32 %v1300_v45, %v1286_v2 }
 0x416   : > { %v1317_v10 = vsel %vm1313_vm0, %v3197_v5, -inf  ;;  %v1199_v11 = vpop.f32.mrf.mxu2  ;;  %v1241_v12 = vpop.f32.mrf.mxu3 }
 0x417   : > { %1333 = vmax.xlane.f32.xlu2 %v1332_v9  ;;  %1318 = vmax.xlane.f32.xlu1 %v1317_v10 }
 0x419   : > { %v1155_v15 = vpop.f32.mrf.mxu1 }
 0x41a   : > { %v1287_v16 = vmul.f32 0.35355338, %v1155_v15 }
 0x41c   : > { %v3202_v20 = vadd.f32 %v1300_v45, %v1287_v16 }
 0x41f   : > { %1345 = vmax.xlane.f32.xlu2 %v1344_v22  ;;  %1324 = vmax.xlane.f32.xlu1 %v1323_v23 }
 0x420   : > { %1589 = vrot.lane.b32.xlu0 %v3140_v6, %s2815_s4  ;;  %v1347_v6 = vsel %vm1313_vm0, %v3215_v32, -inf }
 0x421   : > { %v1157_v24 = vpop.f32.mrf.mxu1 }
 0x427   : > { %1336 = vmax.xlane.f32.xlu1 %v1335_v27 }
 0x42f   : > { %1330 = vmax.xlane.f32.xlu1 %v1329_v29 }
 0x437   : > { %1547 = vrot.lane.b32.xlu2 %v3144_v13, %s2815_s4 }
 0x44a   : > { %1348 = vmax.xlane.f32.xlu0 %v1347_v6 }
 0x452   : > { %1339 = vmax.xlane.f32.xlu0 %v1338_v35 }
 0x472   : > { %v1343_v36 = vpop.xlane.xlu0 %1342 }
 0x473   : > { %v1359_v38 = vsub.f32 %v3188_v47, %v1343_v36 }
 0x475   : > { %v1380_v39 = vmul.f32 1.442695, %v1359_v38 }
 0x477   : > { %2643 = vpow2.f32 %v1380_v39 }
 0x47d   : > { %v3224_v13 = vpop.eup %2643 }
 0x47e   : > { %v1413_v40 = vsel %vm1313_vm0, %v3224_v13, 0.0 }
 0x47f   : > { %1414 = vadd.xlane.f32.xlu1 %v1413_v40  ;;  %v1328_v41 = vpop.xlane.xlu0 %1327 }
 0x480   : > { %v1354_v42 = vsub.f32 %v1305_v58, %v1328_v41 }
 0x482   : > { %v1316_v43 = vpop.xlane.xlu2 %1315  ;;  %v1370_v44 = vmul.f32 1.442695, %v1354_v42 }
 0x483   : > { %v1350_v15 = vsub.f32 %v3193_v60, %v1316_v43  ;;  %v1320_v60 = vsel %vm1313_vm0, %v3202_v20, -inf }
 0x484   : > { %2645 = vpow2.f32 %v1370_v44 }
 0x485   : > { %v1362_v21 = vmul.f32 1.442695, %v1350_v15 }
 0x48a   : > { %v1319_v45 = vpop.xlane.xlu1 %1318  ;;  %v1334_v46 = vpop.xlane.xlu2 %1333 }
 0x48b   : > { %v3228_v48 = vpop.eup %2645  ;;  %v1356_v49 = vsub.f32 %v1307_v4, %v1334_v46  ;;  %v1351_v61 = vsub.f32 %v3197_v5, %v1319_v45 }
 0x48c   : > { %v1398_v47 = vsel %vm1313_vm0, %v3228_v48, 0.0 }
 0x48d   : > { %v1374_v50 = vmul.f32 1.442695, %v1356_v49  ;;  %1399 = vadd.xlane.f32.xlu1 %v1398_v47  ;;  %v1364_v63 = vmul.f32 1.442695, %v1351_v61 }
 0x48f   : > { %2647 = vpow2.f32 %v1374_v50 }
 0x492   : > { %v1325_v51 = vpop.xlane.xlu1 %1324  ;;  %v1346_v52 = vpop.xlane.xlu2 %1345 }
 0x493   : > { %v1353_v53 = vsub.f32 %v1304_v19, %v1325_v51  ;;  %v1360_v54 = vsub.f32 %v1311_v18, %v1346_v52  ;;  %v1590_v55 = vpop.permute.xlu0 %1589 }
 0x494   : > { %v1599_v56 = vsel %vm1477_vm14, %v1590_v55, 0 }
 0x495   : > { %v1368_v57 = vmul.f32 1.442695, %v1353_v53  ;;  %v1382_v58 = vmul.f32 1.442695, %v1360_v54  ;;  %1607 = vmatpush.bf16.msra.mxu0 %v1599_v56  ;;  %v3233_v59 = vpop.eup %2647 }
 0x496   : > { %v1404_v62 = vsel %vm1313_vm0, %v3233_v59, 0.0 }
 0x497   : > { %2649 = vpow2.f32 %v1368_v57  ;;  %1405 = vadd.xlane.f32.xlu0 %v1404_v62 }
 0x498   : > { %2651 = vpow2.f32 %v1382_v58 }
 0x499   : > { %2653 = vpow2.f32 %v1364_v63 }
 0x49a   : > { %v1337_v0 = vpop.xlane.xlu1 %1336  ;;  %v1548_v1 = vpop.permute.xlu2 %1547 }
 0x49b   : > { %v1357_v2 = vsub.f32 %v1308_v25, %v1337_v0  ;;  %1568 = vmatpush.bf16.msrb.mxu3 %v1548_v1 }
 0x49d   : > { %v3238_v3 = vpop.eup %2649  ;;  %v1376_v4 = vmul.f32 1.442695, %v1357_v2 }
 0x49e   : > { %v3240_v7 = vpop.eup %2651  ;;  %v1395_v5 = vsel %vm1313_vm0, %v3238_v3, 0.0 }
 0x49f   : > { %2655 = vpow2.f32 %v1376_v4  ;;  %1396 = vadd.xlane.f32.xlu2 %v1395_v5  ;;  %v1416_v8 = vsel %vm1313_vm0, %v3240_v7, 0.0  ;;  %v3247_v11 = vpop.eup %2653 }
 0x4a0   : > { %1417 = vadd.xlane.f32.xlu0 %v1416_v8  ;;  %v1389_v19 = vsel %vm1313_vm0, %v3247_v11, 0.0 }
 0x4a2   : > { %v1331_v9 = vpop.xlane.xlu1 %1330 }
 0x4a3   : > { %v1355_v10 = vsub.f32 %v3209_v28, %v1331_v9 }
 0x4a5   : > { %v3249_v12 = vpop.eup %2655  ;;  %v1372_v16 = vmul.f32 1.442695, %v1355_v10 }
 0x4a6   : > { %1587 = vrot.lane.b32.xlu1 %v3146_v14, %s2815_s4  ;;  %v1407_v18 = vsel %vm1313_vm0, %v3249_v12, 0.0 }
 0x4a7   : > { %2657 = vpow2.f32 %v1372_v16  ;;  %1408 = vadd.xlane.f32.xlu2 %v1407_v18 }
 0x4a8   : > { %1390 = vadd.xlane.f32.xlu0 %v1389_v19  ;;  %2659 = vpow2.f32 %v1362_v21 }
 0x4ad   : > { %v3258_v22 = vpop.eup %2657 }
 0x4ae   : > { %v1401_v23 = vsel %vm1313_vm0, %v3258_v22, 0.0  ;;  %v3264_v14 = vpop.eup %2659 }
 0x4af   : > { %1321 = vmax.xlane.f32.xlu2 %v1320_v60  ;;  %v1386_v24 = vsel %vm1313_vm0, %v3264_v14, 0.0 }
 0x4b0   : > { %1402 = vadd.xlane.f32.xlu0 %v1401_v23 }
 0x4b7   : > { %1387 = vadd.xlane.f32.xlu2 %v1386_v24 }
 0x4bd   : > { %v1349_v25 = vpop.xlane.xlu0 %1348 }
 0x4be   : > { %v1361_v28 = vsub.f32 %v3215_v32, %v1349_v25 }
 0x4c0   : > { %v1384_v31 = vmul.f32 1.442695, %v1361_v28 }
 0x4c4   : > { %1466 = vrot.lane.b32.xlu0 %v3129_v37, %s2815_s4 }
 0x4c5   : > { %v1340_v26 = vpop.xlane.xlu0 %1339 }
 0x4c6   : > { %v1358_v27 = vsub.f32 %v3219_v34, %v1340_v26 }
 0x4c8   : > { %v1378_v29 = vmul.f32 1.442695, %v1358_v27 }
 0x4ca   : > { %2661 = vpow2.f32 %v1378_v29 }
 0x4cb   : > { %2663 = vpow2.f32 %v1384_v31 }
 0x4cf   : > { %1468 = vrot.lane.b32.xlu2 %v3154_v17, %s2815_s4  ;;  %s3565_s4 = scalar_lea.vmem %s3492_s12, %s3004_s2  ;;  %s3566_s2 = sld [smem:[#allocation8_spill]] }
 0x4d0   : > { %v3274_v33 = vpop.eup %2661 }
 0x4d1   : > { %v1410_v6 = vsel %vm1313_vm0, %v3274_v33, 0.0  ;;  %v3278_v35 = vpop.eup %2663 }
 0x4d2   : > { %1411 = vadd.xlane.f32.xlu1 %v1410_v6  ;;  %v1419_v37 = vsel %vm1313_vm0, %v3278_v35, 0.0 }
 0x4d5   : > { %p2463_p1 = scmp.ne.s32.totalorder %s3566_s2, 1 }
 0x4d6   : > { %s3570_s29 = sld [smem:[#allocation25_spill]] (!%p2463_p1) }
 0x4da   : > { %1420 = vadd.xlane.f32.xlu1 %v1419_v37 }
 0x4f2   : > { %v1415_v32 = vpop.xlane.xlu1 %1414 }
 0x500   : > { %v1400_v34 = vpop.xlane.xlu1 %1399 }
 0x501   : > { %2665 = vrcp.f32 %v1400_v34 }
 0x502   : > { %2667 = vrcp.f32 %v1415_v32 }
 0x507   : > { %v2666_v17 = vpop.eup %2665 }
 0x508   : > { %v2668_v40 = vpop.eup %2667  ;;  %v1438_v41 = vmul.f32 %v2666_v17, %v3228_v48 }
 0x509   : > { %v1443_v42 = vmul.f32 %v2668_v40, %v3224_v13 }
 0x50a   : > { %v1406_v36 = vpop.xlane.xlu0 %1405  ;;  %v1450_v46 = vpack.c.bf16 %v1438_v41, %v1438_v41 }
 0x50b   : > { %v1455_v51 = vpack.c.bf16 %v1443_v42, %v1443_v42 }
 0x50c   : > { %v1503_v56 = vunpack.c.l.b16 %v1450_v46 }
 0x50d   : > { %v1582_v57 = vunpack.c.l.b16 %v1455_v51 }
 0x512   : > { %v1397_v38 = vpop.xlane.xlu2 %1396 }
 0x513   : > { %v1418_v39 = vpop.xlane.xlu0 %1417  ;;  %2669 = vrcp.f32 %v1397_v38 }
 0x514   : > { %2671 = vrcp.f32 %v1418_v39 }
 0x515   : > { %2673 = vrcp.f32 %v1406_v36 }
 0x518   : > { %v1588_v43 = vpop.permute.xlu1 %1587 }
 0x519   : > { %v2670_v44 = vpop.eup %2669  ;;  %1608 = vmatpush.bf16.msra.mxu0 %v1588_v43 }
 0x51a   : > { %v2672_v45 = vpop.eup %2671  ;;  %v1437_v49 = vmul.f32 %v2670_v44, %v3238_v3  ;;  %v1409_v47 = vpop.xlane.xlu2 %1408 }
 0x51b   : > { %v2674_v50 = vpop.eup %2673  ;;  %v1444_v52 = vmul.f32 %v2672_v45, %v3240_v7  ;;  %v1391_v53 = vpop.xlane.xlu0 %1390  ;;  %2675 = vrcp.f32 %v1409_v47 }
 0x51c   : > { %v1449_v54 = vpack.c.bf16 %v1437_v49, %v1437_v49  ;;  %v1440_v48 = vmul.f32 %v2674_v50, %v3233_v59 }
 0x51d   : > { %v1456_v55 = vpack.c.bf16 %v1444_v52, %v1444_v52 }
 0x51e   : > { %v1502_v13 = vunpack.c.l.b16 %v1449_v54  ;;  %v1452_v0 = vpack.c.bf16 %v1440_v48, %v1440_v48 }
 0x51f   : > { %v1583_v58 = vunpack.c.l.b16 %v1456_v55 }
 0x520   : > { %v1505_v61 = vpack.c.b16 %v1503_v56, %v1502_v13  ;;  %v1542_v5 = vunpack.c.l.b16 %v1452_v0  ;;  %v2495_v0 = vld [vmem:[%s3030_s26 + $0x8] sm:$0xff] }
 0x521   : > { %v2676_v62 = vpop.eup %2675  ;;  %v1585_v63 = vpack.c.b16 %v1583_v58, %v1582_v57 }
 0x522   : > { %v1441_v1 = vmul.f32 %v2676_v62, %v3249_v12  ;;  %2405 = vmatmul.msk.bf16.vlgmr.msrb.gmra.mxu2 %vm1313_vm0, %v1505_v61  ;;  %v1322_v2 = vpop.xlane.xlu2 %1321 }
 0x523   : > { %2409 = vmatmul.msk.bf16.vlgmr.msra.gmra.mxu0 %vm1313_vm0, %v1585_v63  ;;  %v1403_v3 = vpop.xlane.xlu0 %1402  ;;  %v1352_v4 = vsub.f32 %v3202_v20, %v1322_v2 }
 0x524   : > { %v1453_v7 = vpack.c.bf16 %v1441_v1, %v1441_v1  ;;  %2677 = vrcp.f32 %v1403_v3  ;;  %v2494_v1 = vld [vmem:[%s3030_s26] sm:$0xff] }
 0x525   : > { %2679 = vrcp.f32 %v1391_v53  ;;  %v1366_v59 = vmul.f32 1.442695, %v1352_v4 }
 0x526   : > { %v1543_v8 = vunpack.c.l.b16 %v1453_v7 }
 0x527   : > { %2681 = vpow2.f32 %v1366_v59 }
 0x528   : > { %v1545_v9 = vpack.c.b16 %v1543_v8, %v1542_v5 }
 0x52a   : > { %v2678_v10 = vpop.eup %2677  ;;  %2407 = vmatmul.msk.bf16.vlgmr.msrb.gmra.mxu3 %vm1313_vm0, %v1545_v9  ;;  %v1388_v12 = vpop.xlane.xlu2 %1387 }
 0x52b   : > { %v2680_v15 = vpop.eup %2679  ;;  %2683 = vrcp.f32 %v1388_v12  ;;  %v1439_v16 = vmul.f32 %v2678_v10, %v3258_v22 }
 0x52c   : > { %v1435_v20 = vmul.f32 %v2680_v15, %v3247_v11 }
 0x52d   : > { %v2682_v18 = vpop.eup %2681  ;;  %v1451_v19 = vpack.c.bf16 %v1439_v16, %v1439_v16 }
 0x52e   : > { %v1392_v21 = vsel %vm1313_vm0, %v2682_v18, 0.0  ;;  %v1447_v25 = vpack.c.bf16 %v1435_v20, %v1435_v20 }
 0x52f   : > { %1393 = vadd.xlane.f32.xlu1 %v1392_v21  ;;  %v1504_v60 = vunpack.c.l.b16 %v1451_v19 }
 0x530   : > { %v1462_v22 = vunpack.c.l.b16 %v1447_v25 }
 0x531   : > { %v2684_v23 = vpop.eup %2683  ;;  %v1506_v24 = vpack.c.b16 %v1504_v60, %v1504_v60 }
 0x532   : > { %v1434_v26 = vmul.f32 %v2684_v23, %v3264_v14  ;;  %v1469_v27 = vpop.permute.xlu2 %1468 }
 0x533   : > { %2406 = vmatmul.msk.bf16.gmra.mxu2 %vm1313_vm0, %v1506_v24  ;;  %v1479_v28 = vsel %vm1477_vm14, %v1469_v27, 0 }
 0x534   : > { %v1446_v29 = vpack.c.bf16 %v1434_v26, %v1434_v26  ;;  %1487 = vmatpush.bf16.msrb.mxu1 %v1479_v28 }
 0x536   : > { %v1461_v31 = vunpack.c.l.b16 %v1446_v29  ;;  %v1467_v6 = vpop.permute.xlu0 %1466 }
 0x538   : > { %1488 = vmatpush.bf16.msrb.mxu1 %v1467_v6  ;;  %v1464_v11 = vpack.c.b16 %v1462_v22, %v1461_v31 }
 0x53b   : > { %2403 = vmatmul.msk.bf16.vlgmr.msrb.gmra.mxu1 %vm1313_vm0, %v1464_v11  ;;  %v2630_v11 = vld [vmem:[%s3562_s24] ss:$0 sm:$0xff] }
 0x53c   : > { %1699 = vmatpush.bf16.msra.mxu1 %v2495_v0 }
 0x540   : > { %1700 = vmatpush.bf16.msra.mxu1 %v2494_v1 }
 0x545   : > { %v1412_v37 = vpop.xlane.xlu1 %1411 }
 0x546   : > { %2685 = vrcp.f32 %v1412_v37 }
 0x54c   : > { %v2686_v32 = vpop.eup %2685 }
 0x54d   : > { %v1421_v34 = vpop.xlane.xlu1 %1420  ;;  %v1442_v14 = vmul.f32 %v2686_v32, %v3274_v33 }
 0x54e   : > { %2687 = vrcp.f32 %v1421_v34  ;;  %v2709_v34 = vld [vmem:[#allocation2] sm:$0xff] }
 0x54f   : > { %v1454_v36 = vpack.c.bf16 %v1442_v14, %v1442_v14 }
 0x551   : > { %v1544_v38 = vunpack.c.l.b16 %v1454_v36 }
 0x553   : > { %v1546_v17 = vpack.c.b16 %v1544_v38, %v1544_v38 }
 0x554   : > { %v2688_v39 = vpop.eup %2687 }
 0x555   : > { %2408 = vmatmul.msk.bf16.gmra.mxu3 %vm1313_vm0, %v1546_v17  ;;  %v1445_v40 = vmul.f32 %v2688_v39, %v3278_v35  ;;  %v2710_v39 = vld [vmem:[#allocation2 + $0x8] sm:$0xff] }
 0x557   : > { %v1457_v41 = vpack.c.bf16 %v1445_v40, %v1445_v40 }
 0x559   : > { %v1584_v42 = vunpack.c.l.b16 %v1457_v41 }
 0x55b   : > { %v1586_v43 = vpack.c.b16 %v1584_v42, %v1584_v42 }
 0x55d   : > { %2410 = vmatmul.msk.bf16.gmra.mxu0 %vm1313_vm0, %v1586_v43 }
 0x5a0   : > { %v1610_v44 = vpop.f32.mrf.mxu0 }
 0x5a2   : > { %v1394_v45 = vpop.xlane.xlu1 %1393 }
 0x5a3   : > { %2689 = vrcp.f32 %v1394_v45 }
 0x5a5   : > { %v1530_v46 = vpop.f32.mrf.mxu2 }
 0x5a8   : > { %v1612_v49 = vpop.f32.mrf.mxu0 }
 0x5a9   : > { %v2690_v33 = vpop.eup %2689  ;;  %v2622_v47 = vpack.i.bf16 %v1612_v49, %v1610_v44  ;;  %v2711_v44 = vld [vmem:[#allocation2 + $0x10] sm:$0xff] }
 0x5aa   : > { %v1436_v50 = vmul.f32 %v2690_v33, %v2682_v18 }
 0x5ab   : > { %2623 = vrot.lane.b32.xlu2 %v2622_v47, %s2817_s1 }
 0x5ac   : > { %v1448_v51 = vpack.c.bf16 %v1436_v50, %v1436_v50 }
 0x5ad   : > { %v1532_v52 = vpop.f32.mrf.mxu2  ;;  %v1570_v53 = vpop.f32.mrf.mxu3 }
 0x5ae   : > { %v2612_v54 = vpack.i.bf16 %v1532_v52, %v1530_v46  ;;  %v1463_v35 = vunpack.c.l.b16 %v1448_v51 }
 0x5b0   : > { %2613 = vrot.lane.b32.xlu1 %v2612_v54, %s2818_s7  ;;  %v1465_v55 = vpack.c.b16 %v1463_v35, %v1463_v35 }
 0x5b2   : > { %2404 = vmatmul.msk.bf16.gmra.mxu1 %vm1313_vm0, %v1465_v55 }
 0x5b5   : > { %v1572_v56 = vpop.f32.mrf.mxu3 }
 0x5b6   : > { %v1535_v48 = vpop.f32.mrf.mxu2  ;;  %v2617_v13 = vpack.i.bf16 %v1572_v56, %v1570_v53 }
 0x5b8   : > { %2618 = vrot.lane.b32.xlu0 %v2617_v13, %s2819_s3  ;;  %v1490_v2 = vpop.f32.mrf.mxu1 }
 0x5be   : > { %v1537_v57 = vpop.f32.mrf.mxu2 }
 0x5c0   : > { %1626 = vrot.lane.b32.xlu0 %v1535_v48, %s2818_s7  ;;  %v1492_v4 = vpop.f32.mrf.mxu1  ;;  %s3572_s7 = sld [smem:[#allocation29_spill]] (!%p2463_p1) }
 0x5d8   : > { %v1575_v58 = vpop.f32.mrf.mxu3 }
 0x5d9   : > { %1638 = vrot.lane.b32.xlu2 %v1575_v58, %s2819_s3  ;;  %s3567_s3 = sld [smem:[#allocation27_spill]] (!%p2463_p1) }
 0x5da   : > { %v1615_v61 = vpop.f32.mrf.mxu0 }
 0x5db   : > { %1650 = vrot.lane.b32.xlu1 %v1615_v61, %s2817_s1  ;;  %s3571_s1 = sld [smem:[#allocation26_spill]] (!%p2463_p1) }
 0x5df   : > { %s3568_s23 = smov (!%p2463_p1), %s3567_s3 }
 0x5e0   : > { %v1577_v62 = vpop.f32.mrf.mxu3 }
 0x5e1   : > { %v2497_v62 = vld [vmem:[%s3047_s28 + $0x8] sm:$0xff] }
 0x5e2   : > { %v1617_v63 = vpop.f32.mrf.mxu0  ;;  %1828 = vmatpush.bf16.msra.mxu2 %v2497_v62 }
 0x605   : > { %v2624_v5 = vpop.permute.xlu2 %2623 }
 0x606   : > { %v2626_v12 = vunpack.i.h.bf16 %v2624_v5  ;;  %v2625_v15 = vunpack.i.l.bf16 %v2624_v5 }
 0x622   : > { %v2614_v3 = vpop.permute.xlu1 %2613 }
 0x623   : > { %v2616_v7 = vunpack.i.h.bf16 %v2614_v3  ;;  %v2615_v59 = vunpack.i.l.bf16 %v2614_v3 }
 0x625   : > { %v1655_v16 = vsel %vm1128_vm13, %v1490_v2, %v2615_v59  ;;  %v1656_v18 = vsel %vm1128_vm13, %v1492_v4, %v2616_v7  ;;  %v2496_v2 = vld [vmem:[%s3047_s28] sm:$0xff] }
 0x626   : > { %1829 = vmatpush.bf16.msra.mxu2 %v2496_v2 }
 0x62a   : > { %v2619_v8 = vpop.permute.xlu0 %2618 }
 0x62b   : > { %v2621_v9 = vunpack.i.h.bf16 %v2619_v8  ;;  %v2620_v10 = vunpack.i.l.bf16 %v2619_v8 }
 0x62d   : > { %v1659_v19 = vsel %vm1658_vm1, %v1655_v16, %v2620_v10  ;;  %v1660_v20 = vsel %vm1658_vm1, %v1656_v18, %v2621_v9 }
 0x62e   : > { %v1662_v21 = vsel %vm1313_vm0, %v1659_v19, %v2625_v15  ;;  %v1663_v60 = vsel %vm1313_vm0, %v1660_v20, %v2626_v12 }
 0x62f   : > { %v1665_v23 = vpack.c.bf16 %v1663_v60, %v1662_v21  ;;  %v1495_v24 = vpop.f32.mrf.mxu1  ;;  %v2631_v60 = vld [vmem:[%s3563_s15] ss:$0 sm:$0xff]  ;;  %s3569_s15 = sld [smem:[#allocation28_spill]] (!%p2463_p1) }
 0x631   : > { %2419 = vmatmul.msk.bf16.vlgmr.msra.gmra.mxu1 %vm942_vm2, %v1665_v23 }
 0x632   : > { %v1627_v26 = vpop.permute.xlu0 %1626 }
 0x633   : > { %v1657_v27 = vsel %vm1128_vm13, %v1495_v24, %v1627_v26  ;;  %v1639_v28 = vpop.permute.xlu2 %1638  ;;  %v2632_v26 = vld [vmem:[%s3564_s16] ss:$0 sm:$0xff] }
 0x634   : > { %v1661_v29 = vsel %vm1658_vm1, %v1657_v27, %v1639_v28 }
 0x637   : > { %v1497_v25 = vpop.f32.mrf.mxu1 }
 0x64d   : > { %v1651_v22 = vpop.permute.xlu1 %1650 }
 0x64e   : > { %v1664_v31 = vsel %vm1313_vm0, %v1661_v29, %v1651_v22 }
 0x64f   : > { %v1666_v6 = vpack.c.bf16 %v1664_v31, %v1664_v31 }
 0x651   : > { %2420 = vmatmul.msk.bf16.gmra.mxu1 %vm942_vm2, %v1666_v6 }
 0x6ae   : > { %v1702_v37 = vpop.f32.mrf.mxu1 }
 0x6af   : > { %v1703_v32 = vadd.f32 %v2630_v11, %v1702_v37 }
 0x6b1   : > { %v3322_v14 = vadd.f32 %v2709_v34, %v1703_v32 }
 0x6b3   : > { %v1716_v36 = vsel %vm942_vm2, %v3322_v14, 0.0 }
 0x6b4   : > { %1717 = vadd.xlane.f32.xlu0 %v1716_v36 }
 0x6b6   : > { %v1704_v38 = vpop.f32.mrf.mxu1 }
 0x6b7   : > { %v1705_v17 = vadd.f32 %v2630_v11, %v1704_v38 }
 0x6b9   : > { %v3326_v40 = vadd.f32 %v2710_v39, %v1705_v17 }
 0x6bb   : > { %v1719_v41 = vsel %vm942_vm2, %v3326_v40, 0.0 }
 0x6bc   : > { %1720 = vadd.xlane.f32.xlu2 %v1719_v41 }
 0x6ce   : > { %v1707_v42 = vpop.f32.mrf.mxu1 }
 0x6cf   : > { %v1708_v43 = vadd.f32 %v2630_v11, %v1707_v42 }
 0x6d1   : > { %v3330_v45 = vadd.f32 %v2711_v44, %v1708_v43 }
 0x6d3   : > { %v1722_v46 = vsel %vm942_vm2, %v3330_v45, 0.0 }
 0x6d4   : > { %1723 = vadd.xlane.f32.xlu1 %v1722_v46 }
 0x6d6   : > { %v1709_v49 = vpop.f32.mrf.mxu1 }
 0x727   : > { %v1718_v33 = vpop.xlane.xlu0 %1717 }
 0x728   : > { %v1725_v47 = vmul.f32 %v1718_v33, %v3094_v30  ;;  %v2505_v33 = vld [vmem:[%s3061_s0 + $0x38] sm:$0xff] }
 0x729   : > { %1988 = vmatpush.bf16.msra.mxu3 %v2505_v33 }
 0x72a   : > { %v1728_v50 = vsub.f32 %v3322_v14, %v1725_v47  ;;  %v2633_v47 = vld [vmem:[%s3565_s4] ss:$0 sm:$0xff] }
 0x72c   : > { %v1731_v51 = vmul.f32 %v1728_v50, %v1728_v50 }
 0x72e   : > { %v1734_v52 = vsel %vm942_vm2, %v1731_v51, 0.0 }
 0x72f   : > { %v1721_v53 = vpop.xlane.xlu2 %1720  ;;  %1735 = vadd.xlane.f32.xlu0 %v1734_v52 }
 0x730   : > { %v1726_v54 = vmul.f32 %v1721_v53, %v3094_v30  ;;  %v2503_v53 = vld [vmem:[%s3061_s0 + $0x28] sm:$0xff] }
 0x732   : > { %v1729_v35 = vsub.f32 %v3326_v40, %v1726_v54 }
 0x734   : > { %v1732_v55 = vmul.f32 %v1729_v35, %v1729_v35 }
 0x736   : > { %v1737_v56 = vsel %vm942_vm2, %v1732_v55, 0.0  ;;  %v2502_v55 = vld [vmem:[%s3061_s0 + $0x20] sm:$0xff] }
 0x737   : > { %1738 = vadd.xlane.f32.xlu2 %v1737_v56 }
 0x747   : > { %v1724_v48 = vpop.xlane.xlu1 %1723 }
 0x748   : > { %v1727_v13 = vmul.f32 %v1724_v48, %v3094_v30 }
 0x74a   : > { %v1730_v57 = vsub.f32 %v3330_v45, %v1727_v13 }
 0x74c   : > { %v1733_v58 = vmul.f32 %v1730_v57, %v1730_v57 }
 0x74e   : > { %v1740_v61 = vsel %vm942_vm2, %v1733_v58, 0.0  ;;  %v2501_v58 = vld [vmem:[%s3061_s0 + $0x18] sm:$0xff] }
 0x74f   : > { %1741 = vadd.xlane.f32.xlu1 %v1740_v61 }
 0x7a2   : > { %v1736_v63 = vpop.xlane.xlu0 %1735 }
 0x7a3   : > { %v1743_v0 = vmul.f32 %v1736_v63, %v3094_v30  ;;  %v2500_v63 = vld [vmem:[%s3061_s0 + $0x10] sm:$0xff] }
 0x7a5   : > { %v1746_v1 = vadd.f32 1e-06, %v1743_v0 }
 0x7a7   : > { %2691 = vrsqrt.f32 %v1746_v1  ;;  %vm1755_vm4 = vweird.f32 %v1746_v1 }
 0x7aa   : > { %v1739_v3 = vpop.xlane.xlu2 %1738 }
 0x7ab   : > { %v1744_v4 = vmul.f32 %v1739_v3, %v3094_v30 }
 0x7ad   : > { %v2692_v7 = vpop.eup %2691  ;;  %v1747_v59 = vadd.f32 1e-06, %v1744_v4  ;;  %v2499_v4 = vld [vmem:[%s3061_s0 + $0x8] sm:$0xff] }
 0x7ae   : > { %v1750_v5 = vmul.f32 %v2692_v7, %v1746_v1  ;;  %vm1756_vm3 = vweird.f32 %v2692_v7 }
 0x7af   : > { %2693 = vrsqrt.f32 %v1747_v59  ;;  %vm1757_vm5 = vmor %vm1755_vm4, %vm1756_vm3  ;;  %vm1765_vm7 = vweird.f32 %v1747_v59 }
 0x7b0   : > { %v1751_v8 = vmul.f32 %v2692_v7, %v1750_v5 }
 0x7b2   : > { %v1752_v9 = vmul.f32 0.5, %v1751_v8  ;;  %v2498_v8 = vld [vmem:[%s3061_s0] sm:$0xff] }
 0x7b4   : > { %v1753_v10 = vsub.f32 1.5, %v1752_v9 }
 0x7b5   : > { %v2694_v12 = vpop.eup %2693 }
 0x7b6   : > { %v1754_v15 = vmul.f32 %v2692_v7, %v1753_v10  ;;  %v1760_v16 = vmul.f32 %v2694_v12, %v1747_v59  ;;  %vm1766_vm6 = vweird.f32 %v2694_v12 }
 0x7b7   : > { %vm1767_vm8 = vmor %vm1765_vm7, %vm1766_vm6 }
 0x7b8   : > { %v1761_v18 = vmul.f32 %v2694_v12, %v1760_v16  ;;  %v1758_v19 = vsel %vm1757_vm5, %v2692_v7, %v1754_v15 }
 0x7b9   : > { %v1779_v23 = vmul.f32 %v1758_v19, %v1728_v50  ;;  %v2504_v50 = vld [vmem:[%s3061_s0 + $0x30] sm:$0xff] }
 0x7ba   : > { %v1762_v20 = vmul.f32 0.5, %v1761_v18  ;;  %1989 = vmatpush.bf16.msra.mxu3 %v2504_v50 }
 0x7bb   : > { %v1785_v27 = vmul.f32 %v2631_v60, %v1779_v23 }
 0x7bc   : > { %v1763_v21 = vsub.f32 1.5, %v1762_v20 }
 0x7bd   : > { %v1791_v6 = vadd.f32 %v2632_v26, %v1785_v27 }
 0x7be   : > { %v1764_v24 = vmul.f32 %v2694_v12, %v1763_v21  ;;  %1990 = vmatpush.bf16.msra.mxu3 %v2503_v53 }
 0x7c0   : > { %v1768_v25 = vsel %vm1767_vm8, %v2694_v12, %v1764_v24 }
 0x7c1   : > { %v1780_v28 = vmul.f32 %v1768_v25, %v1729_v35 }
 0x7c2   : > { %v1742_v22 = vpop.xlane.xlu1 %1741  ;;  %1991 = vmatpush.bf16.msra.mxu3 %v2502_v55 }
 0x7c3   : > { %v1786_v29 = vmul.f32 %v2631_v60, %v1780_v28  ;;  %v1745_v31 = vmul.f32 %v1742_v22, %v3094_v30 }
 0x7c5   : > { %v1792_v11 = vadd.f32 %v2632_v26, %v1786_v29  ;;  %v1748_v37 = vadd.f32 1e-06, %v1745_v31 }
 0x7c6   : > { %1992 = vmatpush.bf16.msra.mxu3 %v2501_v58 }
 0x7c7   : > { %v1794_v32 = vpack.c.bf16 %v1792_v11, %v1791_v6  ;;  %2695 = vrsqrt.f32 %v1748_v37  ;;  %vm1775_vm10 = vweird.f32 %v1748_v37 }
 0x7c9   : > { %2429 = vmatmul.msk.bf16.vlgmr.msra.gmra.mxu2 %vm942_vm2, %v1794_v32 }
 0x7ca   : > { %1993 = vmatpush.bf16.msra.mxu3 %v2500_v63 }
 0x7cd   : > { %v2696_v34 = vpop.eup %2695 }
 0x7ce   : > { %v1770_v36 = vmul.f32 %v2696_v34, %v1748_v37  ;;  %vm1776_vm9 = vweird.f32 %v2696_v34  ;;  %1994 = vmatpush.bf16.msra.mxu3 %v2499_v4 }
 0x7cf   : > { %vm1777_vm11 = vmor %vm1775_vm10, %vm1776_vm9 }
 0x7d0   : > { %v1771_v38 = vmul.f32 %v2696_v34, %v1770_v36 }
 0x7d2   : > { %v1772_v17 = vmul.f32 0.5, %v1771_v38  ;;  %1995 = vmatpush.bf16.msra.mxu3 %v2498_v8 }
 0x7d4   : > { %v1773_v39 = vsub.f32 1.5, %v1772_v17 }
 0x7d6   : > { %v1774_v41 = vmul.f32 %v2696_v34, %v1773_v39 }
 0x7d8   : > { %v1778_v42 = vsel %vm1777_vm11, %v2696_v34, %v1774_v41 }
 0x7d9   : > { %v1781_v43 = vmul.f32 %v1778_v42, %v1730_v57 }
 0x7db   : > { %v1787_v44 = vmul.f32 %v2631_v60, %v1781_v43 }
 0x7dd   : > { %v1793_v46 = vadd.f32 %v2632_v26, %v1787_v44 }
 0x7df   : > { %v1795_v49 = vpack.c.bf16 %v1793_v46, %v1793_v46 }
 0x7e1   : > { %2430 = vmatmul.msk.bf16.gmra.mxu2 %vm942_vm2, %v1795_v49 }
 0x84c   : > { %v1831_v51 = vpop.f32.mrf.mxu2 }
 0x84d   : > { %v3367_v52 = vadd.f32 %v2633_v47, %v1831_v51 }
 0x84f   : > { %v3371_v54 = vmul.f32 0.70710677, %v3367_v52  ;;  %v1840_v63 = vmul.f32 0.5, %v3367_v52 }
 0x851   : > { %v1846_v35 = vand.u32 2147483647, %v3371_v54  ;;  %vm1903_vm12 = vcmp.lt.f32.partialorder %v3371_v54, 0.0 }
 0x853   : > { %v1849_v56 = vmul.f32 0.3275911, %v1846_v35  ;;  %v1885_v2 = vsub.f32 0.0, %v1846_v35 }
 0x854   : > { %v1833_v48 = vpop.f32.mrf.mxu2 }
 0x855   : > { %v1852_v13 = vadd.f32 1.0, %v1849_v56  ;;  %v3375_v57 = vadd.f32 %v2633_v47, %v1833_v48  ;;  %v1888_v5 = vmul.f32 %v1885_v2, %v1846_v35 }
 0x857   : > { %2697 = vrcp.f32 %v1852_v13  ;;  %v3379_v61 = vmul.f32 0.70710677, %v3375_v57  ;;  %v1891_v16 = vmul.f32 1.442695, %v1888_v5 }
 0x859   : > { %v1847_v62 = vand.u32 2147483647, %v3379_v61  ;;  %vm1904_vm13 = vcmp.lt.f32.partialorder %v3379_v61, 0.0 }
 0x85b   : > { %v1850_v0 = vmul.f32 0.3275911, %v1847_v62  ;;  %v1886_v12 = vsub.f32 0.0, %v1847_v62 }
 0x85d   : > { %v2698_v1 = vpop.eup %2697  ;;  %v1853_v3 = vadd.f32 1.0, %v1850_v0  ;;  %v1889_v24 = vmul.f32 %v1886_v12, %v1847_v62  ;;  %v1841_v0 = vmul.f32 0.5, %v3375_v57 }
 0x85e   : > { %v1858_v7 = vmul.f32 1.0614054, %v2698_v1 }
 0x85f   : > { %2699 = vrcp.f32 %v1853_v3  ;;  %v1893_v31 = vmul.f32 1.442695, %v1889_v24 }
 0x860   : > { %v1861_v59 = vadd.f32 -1.4531521, %v1858_v7  ;;  %2701 = vpow2.f32 %v1891_v16 }
 0x861   : > { %2703 = vpow2.f32 %v1893_v31 }
 0x862   : > { %v1864_v9 = vmul.f32 %v2698_v1, %v1861_v59 }
 0x864   : > { %v1867_v10 = vadd.f32 1.4214138, %v1864_v9  ;;  %v1836_v18 = vpop.f32.mrf.mxu2 }
 0x865   : > { %v2700_v15 = vpop.eup %2699  ;;  %v3385_v21 = vadd.f32 %v2633_v47, %v1836_v18 }
 0x866   : > { %v1870_v19 = vmul.f32 %v2698_v1, %v1867_v10  ;;  %v1859_v20 = vmul.f32 1.0614054, %v2700_v15  ;;  %v2702_v34 = vpop.eup %2701 }
 0x867   : > { %v1845_v25 = vmul.f32 0.70710677, %v3385_v21  ;;  %v2704_v43 = vpop.eup %2703  ;;  %v1842_v57 = vmul.f32 0.5, %v3385_v21 }
 0x868   : > { %v1873_v60 = vadd.f32 -0.28449672, %v1870_v19  ;;  %v1862_v23 = vadd.f32 -1.4531521, %v1859_v20  ;;  %v2634_v20 = vld [vmem:[%s865_s20] ss:$0 sm:$0xff] }
 0x869   : > { %v1848_v28 = vand.u32 2147483647, %v1845_v25  ;;  %vm1905_vm14 = vcmp.lt.f32.partialorder %v1845_v25, 0.0 }
 0x86a   : > { %v1876_v26 = vmul.f32 %v2698_v1, %v1873_v60  ;;  %v1865_v27 = vmul.f32 %v2700_v15, %v1862_v23 }
 0x86b   : > { %v1851_v6 = vmul.f32 0.3275911, %v1848_v28  ;;  %v1887_v33 = vsub.f32 0.0, %v1848_v28 }
 0x86c   : > { %v1879_v29 = vadd.f32 0.2548296, %v1876_v26  ;;  %v1868_v22 = vadd.f32 1.4214138, %v1865_v27  ;;  %v1838_v11 = vpop.f32.mrf.mxu2 }
 0x86d   : > { %v1854_v36 = vadd.f32 1.0, %v1851_v6  ;;  %v1890_v55 = vmul.f32 %v1887_v33, %v1848_v28 }
 0x86e   : > { %v1882_v37 = vmul.f32 %v2698_v1, %v1879_v29  ;;  %v1871_v32 = vmul.f32 %v2700_v15, %v1868_v22 }
 0x86f   : > { %2705 = vrcp.f32 %v1854_v36  ;;  %v1895_v2 = vmul.f32 1.442695, %v1890_v55 }
 0x870   : > { %v1897_v38 = vmul.f32 %v2702_v34, %v1882_v37  ;;  %v1874_v17 = vadd.f32 -0.28449672, %v1871_v32 }
 0x871   : > { %2707 = vpow2.f32 %v1895_v2 }
 0x872   : > { %v1900_v39 = vsub.f32 1.0, %v1897_v38  ;;  %v1877_v41 = vmul.f32 %v2700_v15, %v1874_v17 }
 0x874   : > { %v1880_v42 = vadd.f32 0.2548296, %v1877_v41  ;;  %v1906_v44 = vsub.f32 0.0, %v1900_v39 }
 0x875   : > { %v2706_v49 = vpop.eup %2705 }
 0x876   : > { %v1883_v46 = vmul.f32 %v2700_v15, %v1880_v42  ;;  %v1860_v50 = vmul.f32 1.0614054, %v2706_v49  ;;  %v1909_v51 = vsel %vm1903_vm12, %v1906_v44, %v1900_v39 }
 0x877   : > { %v1912_v13 = vadd.f32 1.0, %v1909_v51  ;;  %v2708_v61 = vpop.eup %2707 }
 0x878   : > { %v1898_v47 = vmul.f32 %v2704_v43, %v1883_v46  ;;  %v1863_v35 = vadd.f32 -1.4531521, %v1860_v50 }
 0x879   : > { %v1915_v4 = vmul.f32 %v1912_v13, %v1840_v63 }
 0x87a   : > { %v1901_v53 = vsub.f32 1.0, %v1898_v47  ;;  %v1866_v48 = vmul.f32 %v2706_v49, %v1863_v35 }
 0x87c   : > { %v1907_v56 = vsub.f32 0.0, %v1901_v53  ;;  %v1869_v62 = vadd.f32 1.4214138, %v1866_v48 }
 0x87e   : > { %v1910_v58 = vsel %vm1904_vm13, %v1907_v56, %v1901_v53  ;;  %v1872_v3 = vmul.f32 %v2706_v49, %v1869_v62 }
 0x87f   : > { %v1913_v1 = vadd.f32 1.0, %v1910_v58 }
 0x880   : > { %v1875_v7 = vadd.f32 -0.28449672, %v1872_v3 }
 0x881   : > { %v1916_v54 = vmul.f32 %v1913_v1, %v1841_v0 }
 0x882   : > { %v1878_v5 = vmul.f32 %v2706_v49, %v1875_v7 }
 0x883   : > { %v1918_v59 = vpack.c.bf16 %v1916_v54, %v1915_v4 }
 0x884   : > { %v1881_v8 = vadd.f32 0.2548296, %v1878_v5 }
 0x885   : > { %1996 = vmatmul.bf16.vlgmr.msra.gmra.mxu3 %v1918_v59 }
 0x886   : > { %v1884_v9 = vmul.f32 %v2706_v49, %v1881_v8 }
 0x888   : > { %v1899_v10 = vmul.f32 %v2708_v61, %v1884_v9 }
 0x88a   : > { %v1902_v12 = vsub.f32 1.0, %v1899_v10 }
 0x88c   : > { %v1908_v15 = vsub.f32 0.0, %v1902_v12 }
 0x88e   : > { %v1911_v52 = vsel %vm1905_vm14, %v1908_v15, %v1902_v12 }
 0x88f   : > { %v1914_v16 = vadd.f32 1.0, %v1911_v52 }
 0x891   : > { %v1917_v18 = vmul.f32 %v1914_v16, %v1842_v57 }
 0x893   : > { %v1919_v19 = vpack.c.bf16 %v1917_v18, %v1917_v18 }
 0x895   : > { %2001 = vmatmul.bf16.gmra.mxu3 %v1919_v19 }
 0x908   : > { %v1997_v60 = vpop.f32.mrf.mxu3 }
 0x909   : > { %v1998_v23 = vadd.f32 %v2634_v20, %v1997_v60 }
 0x90b   : > { %v2006_v24 = vadd.f32 %v1998_v23, %v3322_v14 }
 0x90d   : > { %2009 = vst.msk [vmem:[#allocation2] sm:$0xff] %vm942_vm2, %v2006_v24 }
 0x910   : > { %v1999_v26 = vpop.f32.mrf.mxu3 }
 0x911   : > { %v2000_v25 = vadd.f32 %v2634_v20, %v1999_v26 }
 0x913   : > { %v2007_v27 = vadd.f32 %v2000_v25, %v3326_v40 }
 0x915   : > { %2010 = vst.msk [vmem:[#allocation2 + $0x8] sm:$0xff] %vm942_vm2, %v2007_v27 }
 0x918   : > { %v2002_v21 = vpop.f32.mrf.mxu3 }
 0x919   : > { %v2003_v28 = vadd.f32 %v2634_v20, %v2002_v21 }
 0x91b   : > { %v2008_v29 = vadd.f32 %v2003_v28, %v3330_v45 }
 0x91c   : > { %2015 = sbr.rel (%p2463_p1) target bundleno = 2742 (0xab6), region = 108 }
 0x91d   : > { %2011 = vst.msk [vmem:[#allocation2 + $0x10] sm:$0xff] %vm942_vm2, %v2008_v29 }
 0x920   : > { %v2004_v22 = vpop.f32.mrf.mxu3 }
 0x921   : > { %vm2063_vm15 = vcmask 253952   ;;  %v2507_v45 = vld [vmem:[%s3567_s3 + $0x8] sm:$0xff]  ;;  %v2506_v32 = vld [vmem:[%s3568_s23] sm:$0xff]  ;;  %v2017_v34 = vpack.c.bf16 %v2008_v29, %v2008_v29  ;;  %v2016_v36 = vpack.c.bf16 %v2007_v27, %v2006_v24 }
 0x922   : > { %v2064_v14 = vsel %vm2063_vm15, %v2006_v24, 0.0  ;;  %2513 = vmatpush.bf16.msra.mxu2 %v2507_v45  ;;  %2046 = vmatpush.bf16.msra.mxu0 %v2507_v45  ;;  %v2509_v38 = vld [vmem:[%s3569_s15 + $0x8] sm:$0xff]  ;;  %v2508_v17 = vld [vmem:[%s3569_s15] sm:$0xff] }
 0x923   : > { %2065 = vadd.xlane.f32.xlu0 %v2064_v14  ;;  %2115 = vmatpush.bf16.msra.mxu1 %v2509_v38  ;;  %v2061_v50 = vld [vmem:[%s3570_s29] sm:$0x1] }
 0x924   : > { %v2062_v53 = vld [vmem:[%s3571_s1] sm:$0x1] }
 0x925   : > { %v2093_v63 = vld [vmem:[%s3572_s7] sm:$0x1] }
 0x926   : > { %2514 = vmatpush.bf16.msra.mxu2 %v2506_v32  ;;  %2047 = vmatpush.bf16.msra.mxu0 %v2506_v32 }
 0x927   : > { %2116 = vmatpush.bf16.msra.mxu1 %v2508_v17 }
 0x929   : > { %2473 = vmatmul.msk.bf16.vlgmr.msra.gmra.mxu2 %vm942_vm2, %v2017_v34  ;;  %2472 = vmatmul.msk.bf16.vlgmr.msra.gmra.mxu0 %vm942_vm2, %v2016_v36 }
 0x996   : > { %v2066_v31 = vpop.xlane.xlu0 %2065 }
 0x997   : > { %v2067_v6 = vmul.f32 %v2066_v31, %v3094_v30 }
 0x999   : > { %v2068_v11 = vsub.f32 %v2006_v24, %v2067_v6 }
 0x99b   : > { %v2069_v40 = vmul.f32 %v2068_v11, %v2068_v11 }
 0x99d   : > { %v2070_v37 = vsel %vm2063_vm15, %v2069_v40, 0.0 }
 0x99e   : > { %2071 = vadd.xlane.f32.xlu0 %v2070_v37 }
 0x9a6   : > { %v2049_v48 = vpop.f32.mrf.mxu0 }
 0x9a7   : > { %2058 = vst [vmem:[%s3066_s30] sm:$0xff] %v2049_v48 }
 0x9ac   : > { %v2054_v13 = vpop.f32.mrf.mxu2 }
 0x9ad   : > { %2060 = vst [vmem:[%s3066_s30 + $0x10] sm:$0xff] %v2054_v13 }
 0x9ae   : > { %v2051_v58 = vpop.f32.mrf.mxu0 }
 0x9af   : > { %2059 = vst [vmem:[%s3066_s30 + $0x8] sm:$0xff] %v2051_v58 }
 0x9b4   : > { %v2056_v62 = vpop.f32.mrf.mxu2 }
 0xa11   : > { %v2072_v39 = vpop.xlane.xlu0 %2071 }
 0xa12   : > { %v2073_v41 = vmul.f32 %v2072_v39, %v3094_v30 }
 0xa14   : > { %v2074_v42 = vadd.f32 1e-06, %v2073_v41 }
 0xa16   : > { %2712 = vrsqrt.f32 %v2074_v42  ;;  %vm2081_vm1 = vweird.f32 %v2074_v42 }
 0xa1c   : > { %v2713_v43 = vpop.eup %2712 }
 0xa1d   : > { %v2076_v44 = vmul.f32 %v2713_v43, %v2074_v42  ;;  %vm2082_vm0 = vweird.f32 %v2713_v43 }
 0xa1e   : > { %vm2083_vm3 = vmor %vm2081_vm1, %vm2082_vm0 }
 0xa1f   : > { %v2077_v46 = vmul.f32 %v2713_v43, %v2076_v44 }
 0xa21   : > { %v2078_v49 = vmul.f32 0.5, %v2077_v46 }
 0xa23   : > { %v2079_v33 = vsub.f32 1.5, %v2078_v49 }
 0xa25   : > { %v2080_v47 = vmul.f32 %v2713_v43, %v2079_v33 }
 0xa27   : > { %v2084_v51 = vsel %vm2083_vm3, %v2713_v43, %v2080_v47 }
 0xa28   : > { %v2085_v30 = vmul.f32 %v2084_v51, %v2068_v11 }
 0xa2a   : > { %v2086_v35 = vmul.f32 %v2085_v30, %v2061_v50 }
 0xa2c   : > { %v2087_v55 = vadd.f32 %v2086_v35, %v2062_v53 }
 0xa2e   : > { %v2088_v56 = vpack.c.bf16 %v2087_v55, %v2087_v55 }
 0xa30   : > { %2482 = vmatmul.msk.bf16.vlgmr.msra.gmra.mxu1 %vm942_vm2, %v2088_v56 }
 0xaad   : > { %v2118_v0 = vpop.f32.mrf.mxu1 }
 0xaae   : > { %v2119_v1 = vadd.f32 %v2118_v0, %v2093_v63 }
 0xab0   : > { %2122 = vst [vmem:[%s3070_s21] sm:$0x1] %v2119_v1 }
 0xab5   : > { %v2120_v2 = vpop.f32.mrf.mxu1 }
 0xab6 PF: > { %s3573_s3 = sld [smem:[#allocation9_spill]]  ;;  %s2139_s16 = sshll.u32 %s3070_s21, 4  ;;  %s2140_s16 = int_to_ptr.vmem [resolvable:$true] %s2139_s16 }
 0xab7   : > { %s3574_s28 = sld [smem:[#allocation30_spill]]  ;;  %s3577_s27 = sand.u32 1, %s2784_s25  }
 0xab8   : > { %s2124_s29 = scalar_lea.sflag [#allocation4], %s3577_s27 }
 0xabd   : > { %s3575_s22 = smov %s3574_s28  ;;  %s2137_s19 = scalar_lea.hbm %s3574_s28, %s3573_s3 }
 0xabe   : > { %s2141_s30 = sshll.u32 %s2137_s19, 4  ;;  %s2734_s20 = scalar_lea.hbm %s3575_s22, 2  ;;  %s2142_s30 = int_to_ptr.hbm [resolvable:$true] %s2141_s30 }
 0xabf   : > { %s2728_s4 = sshra.s32 %s2142_s30, 4  ;;  %s2729_s4 = int_to_ptr.hbm [resolvable:$true] %s2728_s4 }
 0xac0   : > { %s2730_s0 = scalar_lea.hbm %s2729_s4, 1  ;;  %p2735_p6 = scmp.lt.s32.totalorder %s2729_s4, %s3575_s22 }
 0xac1   : > { %p2731_p2 = scmp.ne.s32.totalorder %s2729_s4, %s2730_s0  ;;  %p2736_p7 = scmp.lt.s32.totalorder %s2734_s20, %s2730_s0 }
 0xac3   : > { %p2732_p4 = pnand %p2731_p2, %p2979_p3  ;;  %p2737_p8 = por %p2736_p7, %p2735_p6 }
 0xac5   : > { %p2733_p5 = pneg %p2732_p4 }
 0xac7   : > { %p2738_p10 = pnand %p2737_p8, %p2733_p5 }
 0xac9   : > { %2741 = shalt.err (!%p2738_p10)
}
 0xaca   : > { %2516 = dma.vmem_to_hbm [thread:$0]  (%p2979_p3), %s2140_s16, 16, %s2142_s30, %s2124_s29  }
 0xacb PF: > { %s3578_s21 = sld [smem:[#allocation12_spill]] }
 0xacc   : > { %s3579_s3 = sld [smem:[#allocation6_spill]] }
 0xad1   : > { %p2522_p11 = scmp.ge.s32.totalorder %s3578_s21, 2 }
 0xad2   : > { %s2156_s28 = sand.u32 1, %s3579_s3  }
 0xad3   : > { %p2519_p12 = pnand %p2522_p11, %p2989_p9  ;;  %s2157_s19 = scalar_lea.sflag [#allocation4], %s2156_s28 }
 0xad5   : > { %p2520_p13 = pneg %p2519_p12 }
 0xad7   : > { %2775 = dma.done.wait (%p2520_p13), %s2157_s19, 16  }
 0xad8   : > { %2777 = vsyncadd (%p2520_p13), %s2157_s19, 4294967280  ;;  %s35_s0 = sadd.s32 1, %s3578_s21   ;;  %s3581_s27 = sld [smem:[#allocation7_spill]] }
 0xad9   : > { %p32_p0 = scmp.ge.s32.totalorder %s35_s0, 6   ;;  %s3582_s26 = sld [smem:[#allocation17_spill]] }
 0xada   : > { %s3583_s17 = sld [smem:[#allocation10_spill]]  ;;  %s3587_s2 = smov %s2784_s25 }
 0xadb   : > { %s3584_s3 = sld [smem:[#allocation11_spill]] }
 0xadc   : > { %s3585_s28 = sld [smem:[#allocation13_spill]]  ;;  %34 = sbr.rel (!%p32_p0) target bundleno = 20 (0x14), region = 191 }
 0xadd   : > { %s3586_s29 = sld [smem:[#allocation15_spill]] }
 0xade   : > { %s3588_s25 = smov %s3581_s27 }
 0xae0   : > { %s3589_s27 = smov %s3583_s17 }
 0xae1   :  { %2170 = vsyncpa [#allocation4], 1 }
 0xae2   :  { %2172 = vsyncpa [#allocation4 + $0x1], 1 }

</bundles_post_ra>
